<compile_context>
chip_gen: v7x
topology: tpu7x:2x2x1
jax: 0.10.0
libtpu: 0.0.40
codegen_flags: <defaults>
</compile_context>

<pallas_src>
import functools
import math

import jax
import jax.numpy as jnp
from jax.experimental import pallas as pl
from jax.experimental.pallas import tpu as pltpu

# --------------------------------------------------------------------------------------
# config (small synthetic shapes consistent with the module's forward)
# --------------------------------------------------------------------------------------
CFG = dict(
    vocab=100, type_vocab=2, max_pos=32,
    hidden=32, heads=2, inter=64, layers=2,
    seq=8, batch=2,
    proj_dim=32, n_proj_layers=2,
)

_VMEM = pl.BlockSpec(memory_space=pltpu.MemorySpace.VMEM)


# --------------------------------------------------------------------------------------
# helpers usable inside kernels
# --------------------------------------------------------------------------------------
def _erf(x):
    # Abramowitz & Stegun 7.1.26 rational approximation (max abs err ~1.5e-7, i.e.
    # exact at float32 precision) — matches torch.nn.GELU() (exact erf) at f32.
    # Kept instead of lax.erf to guarantee Mosaic lowering; the exp goes to the EUP.
    a1, a2, a3, a4, a5 = 0.254829592, -0.284496736, 1.421413741, -1.453152027, 1.061405429
    p = 0.3275911
    s = jnp.where(x >= 0.0, 1.0, -1.0)
    ax = jnp.abs(x)
    t = 1.0 / (1.0 + p * ax)
    poly = ((((a5 * t + a4) * t + a3) * t + a2) * t + a1) * t
    return s * (1.0 - poly * jnp.exp(-ax * ax))


def _gelu(x):
    return 0.5 * x * (1.0 + _erf(x * 0.7071067811865476))


def _ln(h, g, b, eps):
    mu = jnp.mean(h, axis=-1, keepdims=True)
    var = jnp.mean((h - mu) * (h - mu), axis=-1, keepdims=True)
    return (h - mu) * jax.lax.rsqrt(var + eps) * g + b


# --------------------------------------------------------------------------------------
# Pallas kernels
# --------------------------------------------------------------------------------------
def _ln_kernel(x_ref, g_ref, b_ref, o_ref, *, eps):
    # plain LayerNorm over the feature (lane) axis
    o_ref[...] = _ln(x_ref[...], g_ref[...], b_ref[...], eps)


def _bert_layer_kernel(x_ref, bias_ref,
                       wqkv_ref, bqkv_ref, wo_ref, bo_ref,
                       ln1_g_ref, ln1_b_ref,
                       wi_ref, bi_ref, wo2_ref, bo2_ref,
                       ln2_g_ref, ln2_b_ref,
                       o_ref, *, B, S, nh, dh, scale, eps):
    # One fused transformer encoder layer on a (B*S, H) slab; everything in VMEM/vregs.
    H = nh * dh
    x = x_ref[...]                                                     # (B*S, H)

    # fused QKV projection — single lane-dense (H x 3H) matmul
    qkv = jnp.dot(x, wqkv_ref[...], preferred_element_type=jnp.float32) + bqkv_ref[...]
    q = qkv[:, 0 * H:1 * H]
    k = qkv[:, 1 * H:2 * H]
    v = qkv[:, 2 * H:3 * H]

    # attention, statically unrolled over (batch, head) — only 2-D MXU ops, no transposes
    ctx_rows = []
    for b in range(B):
        r0 = b * S
        bias_b = bias_ref[b:b + 1, :]                                  # (1, S) additive mask
        head_ctx = []
        for h in range(nh):
            c0 = h * dh
            qh = q[r0:r0 + S, c0:c0 + dh]                              # (S, dh)
            kh = k[r0:r0 + S, c0:c0 + dh]
            vh = v[r0:r0 + S, c0:c0 + dh]
            s = jax.lax.dot_general(qh, kh, (((1,), (1,)), ((), ())),  # q @ k^T
                                    preferred_element_type=jnp.float32) * scale
            s = s + bias_b
            m = jnp.max(s, axis=-1, keepdims=True)
            p = jnp.exp(s - m)
            p = p * pl.reciprocal(jnp.sum(p, axis=-1, keepdims=True), approx=True)
            head_ctx.append(jnp.dot(p, vh, preferred_element_type=jnp.float32))
        ctx_rows.append(jnp.concatenate(head_ctx, axis=1))             # (S, H)
    ctx = jnp.concatenate(ctx_rows, axis=0)                            # (B*S, H)

    # output projection + residual + LayerNorm
    attn = jnp.dot(ctx, wo_ref[...], preferred_element_type=jnp.float32) + bo_ref[...]
    h1 = _ln(attn + x, ln1_g_ref[...], ln1_b_ref[...], eps)

    # GELU feed-forward + residual + LayerNorm
    inter = _gelu(jnp.dot(h1, wi_ref[...], preferred_element_type=jnp.float32) + bi_ref[...])
    ffn = jnp.dot(inter, wo2_ref[...], preferred_element_type=jnp.float32) + bo2_ref[...]
    o_ref[...] = _ln(ffn + h1, ln2_g_ref[...], ln2_b_ref[...], eps)


def _tail_kernel(*refs, B, S, n_proj, eps):
    # fused: CLS slice -> pooler tanh(Linear) -> first projection -> n_proj residual blocks
    x_ref, pw_ref, pb_ref, fw_ref, fb_ref = refs[:5]
    proj_refs = refs[5:5 + 4 * n_proj]
    o_ref = refs[5 + 4 * n_proj]

    # gather the CLS row of every batch element (rows b*S of the (B*S, H) slab)
    cls = jnp.concatenate([x_ref[b * S:b * S + 1, :] for b in range(B)], axis=0)   # (B, H)

    # BERT pooler
    pooled = jnp.tanh(jnp.dot(cls, pw_ref[...], preferred_element_type=jnp.float32) + pb_ref[...])

    # Project_Embeddings.first_layer
    out = jnp.dot(pooled, fw_ref[...], preferred_element_type=jnp.float32) + fb_ref[...]

    # Project_Embeddings_one_layer x n_proj : LayerNorm(Linear(GELU(x)) + x), dropout=identity
    for i in range(n_proj):
        w_ref, b_ref, g_ref, be_ref = proj_refs[4 * i:4 * i + 4]
        y = jnp.dot(_gelu(out), w_ref[...], preferred_element_type=jnp.float32) + b_ref[...]
        out = _ln(y + out, g_ref[...], be_ref[...], eps)

    o_ref[...] = out


# --------------------------------------------------------------------------------------
# wrappers around pallas_call
# --------------------------------------------------------------------------------------
def layernorm(x, g, b, eps):
    return pl.pallas_call(
        functools.partial(_ln_kernel, eps=eps),
        out_shape=jax.ShapeDtypeStruct(x.shape, jnp.float32),
        in_specs=[_VMEM, _VMEM, _VMEM],
        out_specs=_VMEM,
    )(x, g, b)


def bert_layer_fused(x, bias, p, B, S):
    H = CFG["hidden"]
    nh = CFG["heads"]
    dh = H // nh
    return pl.pallas_call(
        functools.partial(_bert_layer_kernel, B=B, S=S, nh=nh, dh=dh,
                          scale=1.0 / math.sqrt(dh), eps=1e-12),
        out_shape=jax.ShapeDtypeStruct(x.shape, jnp.float32),
        in_specs=[_VMEM] * 14,
        out_specs=_VMEM,
    )(x, bias,
      p["wqkv"], p["bqkv"], p["wo"], p["bo"],
      p["ln1_g"], p["ln1_b"],
      p["wi"], p["bi"], p["wo2"], p["bo2"],
      p["ln2_g"], p["ln2_b"])


def tail_fused(hidden_slab, params, B, S):
    inputs = [hidden_slab,
              params["pooler_w"], params["pooler_b"],
              params["first_w"], params["first_b"]]
    for lp in params["proj_layers"]:
        inputs += [lp["w"], lp["b"], lp["g"], lp["be"]]
    n_proj = len(params["proj_layers"])
    return pl.pallas_call(
        functools.partial(_tail_kernel, B=B, S=S, n_proj=n_proj, eps=1e-5),  # nn.LayerNorm default eps
        out_shape=jax.ShapeDtypeStruct((B, CFG["proj_dim"]), jnp.float32),
        in_specs=[_VMEM] * len(inputs),
        out_specs=_VMEM,
    )(*inputs)


# --------------------------------------------------------------------------------------
# parameter init (deterministic, synthetic; weights stored as (in, out), biases as (1, out))
# --------------------------------------------------------------------------------------
def init_params(key):
    state = {"key": key}

    def w(shape, scale=0.02):
        state["key"], sub = jax.random.split(state["key"])
        return scale * jax.random.normal(sub, shape, jnp.float32)

    H, I, P = CFG["hidden"], CFG["inter"], CFG["proj_dim"]
    params = dict(
        word_emb=w((CFG["vocab"], H)),
        pos_emb=w((CFG["max_pos"], H)),
        type_emb=w((CFG["type_vocab"], H)),
        emb_ln_g=jnp.ones((1, H), jnp.float32),
        emb_ln_b=jnp.zeros((1, H), jnp.float32),
        layers=[],
        pooler_w=w((H, H)), pooler_b=w((1, H)),
        first_w=w((H, P)), first_b=w((1, P)),
        proj_layers=[],
    )
    for _ in range(CFG["layers"]):
        params["layers"].append(dict(
            wqkv=w((H, 3 * H)), bqkv=w((1, 3 * H)),        # fused Q|K|V
            wo=w((H, H)), bo=w((1, H)),
            ln1_g=jnp.ones((1, H), jnp.float32), ln1_b=jnp.zeros((1, H), jnp.float32),
            wi=w((H, I)), bi=w((1, I)),
            wo2=w((I, H)), bo2=w((1, H)),
            ln2_g=jnp.ones((1, H), jnp.float32), ln2_b=jnp.zeros((1, H), jnp.float32),
        ))
    for _ in range(CFG["n_proj_layers"]):
        params["proj_layers"].append(dict(
            w=w((P, P)), b=w((1, P)),
            g=jnp.ones((1, P), jnp.float32), be=jnp.zeros((1, P), jnp.float32),
        ))
    return params


# --------------------------------------------------------------------------------------
# forward pass
# --------------------------------------------------------------------------------------
def text_encoder_bert_forward(params, input_ids, token_type_ids, attention_mask):
    B, S = input_ids.shape
    H = CFG["hidden"]

    # embedding gathers stay in plain JAX (table lookups); everything else is Pallas.
    pos_ids = jnp.arange(S, dtype=jnp.int32)
    emb = (params["word_emb"][input_ids]
           + params["pos_emb"][pos_ids][None, :, :]
           + params["type_emb"][token_type_ids])
    x = layernorm(emb.reshape(B * S, H), params["emb_ln_g"], params["emb_ln_b"], eps=1e-12)

    # extended attention mask -> additive bias (B, S)
    bias = (1.0 - attention_mask.astype(jnp.float32)) * (-1e9)

    for p in params["layers"]:
        x = bert_layer_fused(x, bias, p, B, S)

    # fused pooler + projection head (CLS rows sliced in-kernel)
    return tail_fused(x, params, B, S)


# --------------------------------------------------------------------------------------
if __name__ == "__main__":
    key = jax.random.PRNGKey(0)
    pkey, ikey = jax.random.split(key)
    params = init_params(pkey)

    B, S = CFG["batch"], CFG["seq"]
    input_ids = jax.random.randint(ikey, (B, S), 0, CFG["vocab"], dtype=jnp.int32)
    token_type_ids = jnp.zeros((B, S), jnp.int32)
    attention_mask = jnp.array([[1] * S, [1] * (S - 2) + [0] * 2], jnp.int32)

    fwd = jax.jit(text_encoder_bert_forward)
    out = fwd(params, input_ids, token_type_ids, attention_mask)
    out = jax.block_until_ready(out)

    assert out.shape == (B, CFG["proj_dim"]), out.shape
    assert bool(jnp.all(jnp.isfinite(out)))
    print("KERNEL_OK")
</pallas_src>

<mosaic_0001>
module attributes {stable_mosaic.version = 11 : i64} {
  func.func @_ln_kernel(%arg0: memref<16x32xf32, #tpu.memory_space<vmem>>, %arg1: memref<1x32xf32, #tpu.memory_space<vmem>>, %arg2: memref<1x32xf32, #tpu.memory_space<vmem>>, %arg3: memref<16x32xf32, #tpu.memory_space<vmem>>) attributes {dimension_semantics = [], scalar_prefetch = 0 : i64, scratch_operands = 0 : i64, tpu.core_type = #tpu.core_type<tc>} {
    %c0 = arith.constant 0 : index
    %c0_0 = arith.constant 0 : index
    %0 = vector.load %arg0[%c0, %c0_0] : memref<16x32xf32, #tpu.memory_space<vmem>>, vector<16x32xf32>
    %c0_1 = arith.constant 0 : index
    %c0_2 = arith.constant 0 : index
    %1 = vector.load %arg1[%c0_1, %c0_2] : memref<1x32xf32, #tpu.memory_space<vmem>>, vector<1x32xf32>
    %c0_3 = arith.constant 0 : index
    %c0_4 = arith.constant 0 : index
    %2 = vector.load %arg2[%c0_3, %c0_4] : memref<1x32xf32, #tpu.memory_space<vmem>>, vector<1x32xf32>
    %cst = arith.constant dense<0.000000e+00> : vector<16xf32>
    %3 = vector.multi_reduction <add>, %0, %cst [1] : vector<16x32xf32> to vector<16xf32>
    %4 = vector.shape_cast %3 : vector<16xf32> to vector<16x1xf32>
    %cst_5 = arith.constant 3.200000e+01 : f32
    %5 = vector.broadcast %cst_5 : f32 to vector<16x1xf32>
    %6 = arith.divf %4, %5 : vector<16x1xf32>
    %7 = vector.broadcast %6 : vector<16x1xf32> to vector<16x32xf32>
    %8 = arith.subf %0, %7 : vector<16x32xf32>
    %9 = vector.broadcast %6 : vector<16x1xf32> to vector<16x32xf32>
    %10 = arith.subf %0, %9 : vector<16x32xf32>
    %11 = arith.mulf %8, %10 : vector<16x32xf32>
    %cst_6 = arith.constant dense<0.000000e+00> : vector<16xf32>
    %12 = vector.multi_reduction <add>, %11, %cst_6 [1] : vector<16x32xf32> to vector<16xf32>
    %13 = vector.shape_cast %12 : vector<16xf32> to vector<16x1xf32>
    %cst_7 = arith.constant 3.200000e+01 : f32
    %14 = vector.broadcast %cst_7 : f32 to vector<16x1xf32>
    %15 = arith.divf %13, %14 : vector<16x1xf32>
    %16 = vector.broadcast %6 : vector<16x1xf32> to vector<16x32xf32>
    %17 = arith.subf %0, %16 : vector<16x32xf32>
    %cst_8 = arith.constant 9.99999996E-13 : f32
    %18 = vector.broadcast %cst_8 : f32 to vector<16x1xf32>
    %19 = arith.addf %15, %18 : vector<16x1xf32>
    %20 = math.rsqrt %19 : vector<16x1xf32>
    %21 = vector.broadcast %20 : vector<16x1xf32> to vector<16x32xf32>
    %22 = arith.mulf %17, %21 : vector<16x32xf32>
    %23 = vector.broadcast %1 : vector<1x32xf32> to vector<16x32xf32>
    %24 = arith.mulf %22, %23 : vector<16x32xf32>
    %25 = vector.broadcast %2 : vector<1x32xf32> to vector<16x32xf32>
    %26 = arith.addf %24, %25 : vector<16x32xf32>
    %c0_9 = arith.constant 0 : index
    %c0_10 = arith.constant 0 : index
    %27 = vector.load %arg3[%c0_9, %c0_10] : memref<16x32xf32, #tpu.memory_space<vmem>>, vector<16x32xf32>
    tpu.vector_store %arg3[%c0_9, %c0_10], %26 {strides = array<i32>} : memref<16x32xf32, #tpu.memory_space<vmem>>, vector<16x32xf32>,
    return
  }
}

module attributes {stable_mosaic.version = 11 : i64} {
  func.func @_tail_kernel(%arg0: memref<16x32xf32, #tpu.memory_space<vmem>>, %arg1: memref<32x32xf32, #tpu.memory_space<vmem>>, %arg2: memref<1x32xf32, #tpu.memory_space<vmem>>, %arg3: memref<32x32xf32, #tpu.memory_space<vmem>>, %arg4: memref<1x32xf32, #tpu.memory_space<vmem>>, %arg5: memref<32x32xf32, #tpu.memory_space<vmem>>, %arg6: memref<1x32xf32, #tpu.memory_space<vmem>>, %arg7: memref<1x32xf32, #tpu.memory_space<vmem>>, %arg8: memref<1x32xf32, #tpu.memory_space<vmem>>, %arg9: memref<32x32xf32, #tpu.memory_space<vmem>>, %arg10: memref<1x32xf32, #tpu.memory_space<vmem>>, %arg11: memref<1x32xf32, #tpu.memory_space<vmem>>, %arg12: memref<1x32xf32, #tpu.memory_space<vmem>>, %arg13: memref<2x32xf32, #tpu.memory_space<vmem>>) attributes {dimension_semantics = [], scalar_prefetch = 0 : i64, scratch_operands = 0 : i64, tpu.core_type = #tpu.core_type<tc>} {
    %c0 = arith.constant 0 : index
    %c0_0 = arith.constant 0 : index
    %0 = vector.load %arg0[%c0, %c0_0] : memref<16x32xf32, #tpu.memory_space<vmem>>, vector<1x32xf32>
    %c8 = arith.constant 8 : index
    %c0_1 = arith.constant 0 : index
    %1 = vector.load %arg0[%c8, %c0_1] : memref<16x32xf32, #tpu.memory_space<vmem>>, vector<1x32xf32>
    %2 = tpu.concatenate %0, %1 in 0 : vector<1x32xf32>, vector<1x32xf32> -> vector<2x32xf32>
    %c0_2 = arith.constant 0 : index
    %c0_3 = arith.constant 0 : index
    %3 = vector.load %arg1[%c0_2, %c0_3] : memref<32x32xf32, #tpu.memory_space<vmem>>, vector<32x32xf32>
    %cst = arith.constant dense<0.000000e+00> : vector<2x32xf32>
    %4 = tpu.matmul %2, %3, %cst {dimension_numbers = #tpu.dot_dimension_numbers<[1], [0], [0], [1], [0, 0, 1, 1], [], []>} : vector<2x32xf32>, vector<32x32xf32>, vector<2x32xf32> -> vector<2x32xf32>
    %c0_4 = arith.constant 0 : index
    %c0_5 = arith.constant 0 : index
    %5 = vector.load %arg2[%c0_4, %c0_5] : memref<1x32xf32, #tpu.memory_space<vmem>>, vector<1x32xf32>
    %6 = vector.broadcast %5 : vector<1x32xf32> to vector<2x32xf32>
    %7 = arith.addf %4, %6 : vector<2x32xf32>
    %8 = math.tanh %7 : vector<2x32xf32>
    %c0_6 = arith.constant 0 : index
    %c0_7 = arith.constant 0 : index
    %9 = vector.load %arg3[%c0_6, %c0_7] : memref<32x32xf32, #tpu.memory_space<vmem>>, vector<32x32xf32>
    %cst_8 = arith.constant dense<0.000000e+00> : vector<2x32xf32>
    %10 = tpu.matmul %8, %9, %cst_8 {dimension_numbers = #tpu.dot_dimension_numbers<[1], [0], [0], [1], [0, 0, 1, 1], [], []>} : vector<2x32xf32>, vector<32x32xf32>, vector<2x32xf32> -> vector<2x32xf32>
    %c0_9 = arith.constant 0 : index
    %c0_10 = arith.constant 0 : index
    %11 = vector.load %arg4[%c0_9, %c0_10] : memref<1x32xf32, #tpu.memory_space<vmem>>, vector<1x32xf32>
    %12 = vector.broadcast %11 : vector<1x32xf32> to vector<2x32xf32>
    %13 = arith.addf %10, %12 : vector<2x32xf32>
    %cst_11 = arith.constant 5.000000e-01 : f32
    %14 = vector.broadcast %cst_11 : f32 to vector<2x32xf32>
    %15 = arith.mulf %14, %13 : vector<2x32xf32>
    %cst_12 = arith.constant 0.707106769 : f32
    %16 = vector.broadcast %cst_12 : f32 to vector<2x32xf32>
    %17 = arith.mulf %13, %16 : vector<2x32xf32>
    %cst_13 = arith.constant 0.000000e+00 : f32
    %18 = vector.broadcast %cst_13 : f32 to vector<2x32xf32>
    %19 = arith.cmpf oge, %17, %18 : vector<2x32xf32>
    %cst_14 = arith.constant 1.000000e+00 : f32
    %cst_15 = arith.constant -1.000000e+00 : f32
    %20 = vector.broadcast %cst_14 : f32 to vector<2x32xf32>
    %21 = vector.broadcast %cst_15 : f32 to vector<2x32xf32>
    %22 = arith.select %19, %20, %21 : vector<2x32xi1>, vector<2x32xf32>
    %23 = math.absf %17 : vector<2x32xf32>
    %cst_16 = arith.constant 0.327591091 : f32
    %24 = vector.broadcast %cst_16 : f32 to vector<2x32xf32>
    %25 = arith.mulf %24, %23 : vector<2x32xf32>
    %cst_17 = arith.constant 1.000000e+00 : f32
    %26 = vector.broadcast %cst_17 : f32 to vector<2x32xf32>
    %27 = arith.addf %26, %25 : vector<2x32xf32>
    %cst_18 = arith.constant 1.000000e+00 : f32
    %28 = vector.broadcast %cst_18 : f32 to vector<2x32xf32>
    %29 = arith.divf %28, %27 : vector<2x32xf32>
    %cst_19 = arith.constant 1.06140542 : f32
    %30 = vector.broadcast %cst_19 : f32 to vector<2x32xf32>
    %31 = arith.mulf %30, %29 : vector<2x32xf32>
    %cst_20 = arith.constant -1.45315206 : f32
    %32 = vector.broadcast %cst_20 : f32 to vector<2x32xf32>
    %33 = arith.addf %31, %32 : vector<2x32xf32>
    %34 = arith.mulf %33, %29 : vector<2x32xf32>
    %cst_21 = arith.constant 1.42141378 : f32
    %35 = vector.broadcast %cst_21 : f32 to vector<2x32xf32>
    %36 = arith.addf %34, %35 : vector<2x32xf32>
    %37 = arith.mulf %36, %29 : vector<2x32xf32>
    %cst_22 = arith.constant -0.284496725 : f32
    %38 = vector.broadcast %cst_22 : f32 to vector<2x32xf32>
    %39 = arith.addf %37, %38 : vector<2x32xf32>
    %40 = arith.mulf %39, %29 : vector<2x32xf32>
    %cst_23 = arith.constant 0.254829586 : f32
    %41 = vector.broadcast %cst_23 : f32 to vector<2x32xf32>
    %42 = arith.addf %40, %41 : vector<2x32xf32>
    %43 = arith.mulf %42, %29 : vector<2x32xf32>
    %cst_24 = arith.constant 0.000000e+00 : f32
    %44 = vector.broadcast %cst_24 : f32 to vector<2x32xf32>
    %45 = arith.subf %44, %23 : vector<2x32xf32>
    %46 = arith.mulf %45, %23 : vector<2x32xf32>
    %47 = math.exp %46 : vector<2x32xf32>
    %48 = arith.mulf %43, %47 : vector<2x32xf32>
    %cst_25 = arith.constant 1.000000e+00 : f32
    %49 = vector.broadcast %cst_25 : f32 to vector<2x32xf32>
    %50 = arith.subf %49, %48 : vector<2x32xf32>
    %51 = arith.mulf %22, %50 : vector<2x32xf32>
    %cst_26 = arith.constant 1.000000e+00 : f32
    %52 = vector.broadcast %cst_26 : f32 to vector<2x32xf32>
    %53 = arith.addf %52, %51 : vector<2x32xf32>
    %54 = arith.mulf %15, %53 : vector<2x32xf32>
    %c0_27 = arith.constant 0 : index
    %c0_28 = arith.constant 0 : index
    %55 = vector.load %arg5[%c0_27, %c0_28] : memref<32x32xf32, #tpu.memory_space<vmem>>, vector<32x32xf32>
    %cst_29 = arith.constant dense<0.000000e+00> : vector<2x32xf32>
    %56 = tpu.matmul %54, %55, %cst_29 {dimension_numbers = #tpu.dot_dimension_numbers<[1], [0], [0], [1], [0, 0, 1, 1], [], []>} : vector<2x32xf32>, vector<32x32xf32>, vector<2x32xf32> -> vector<2x32xf32>
    %c0_30 = arith.constant 0 : index
    %c0_31 = arith.constant 0 : index
    %57 = vector.load %arg6[%c0_30, %c0_31] : memref<1x32xf32, #tpu.memory_space<vmem>>, vector<1x32xf32>
    %58 = vector.broadcast %57 : vector<1x32xf32> to vector<2x32xf32>
    %59 = arith.addf %56, %58 : vector<2x32xf32>
    %60 = arith.addf %59, %13 : vector<2x32xf32>
    %c0_32 = arith.constant 0 : index
    %c0_33 = arith.constant 0 : index
    %61 = vector.load %arg7[%c0_32, %c0_33] : memref<1x32xf32, #tpu.memory_space<vmem>>, vector<1x32xf32>
    %c0_34 = arith.constant 0 : index
    %c0_35 = arith.constant 0 : index
    %62 = vector.load %arg8[%c0_34, %c0_35] : memref<1x32xf32, #tpu.memory_space<vmem>>, vector<1x32xf32>
    %cst_36 = arith.constant dense<0.000000e+00> : vector<2xf32>
    %63 = vector.multi_reduction <add>, %60, %cst_36 [1] : vector<2x32xf32> to vector<2xf32>
    %64 = vector.shape_cast %63 : vector<2xf32> to vector<2x1xf32>
    %cst_37 = arith.constant 3.200000e+01 : f32
    %65 = vector.broadcast %cst_37 : f32 to vector<2x1xf32>
    %66 = arith.divf %64, %65 : vector<2x1xf32>
    %67 = vector.broadcast %66 : vector<2x1xf32> to vector<2x32xf32>
    %68 = arith.subf %60, %67 : vector<2x32xf32>
    %69 = vector.broadcast %66 : vector<2x1xf32> to vector<2x32xf32>
    %70 = arith.subf %60, %69 : vector<2x32xf32>
    %71 = arith.mulf %68, %70 : vector<2x32xf32>
    %cst_38 = arith.constant dense<0.000000e+00> : vector<2xf32>
    %72 = vector.multi_reduction <add>, %71, %cst_38 [1] : vector<2x32xf32> to vector<2xf32>
    %73 = vector.shape_cast %72 : vector<2xf32> to vector<2x1xf32>
    %cst_39 = arith.constant 3.200000e+01 : f32
    %74 = vector.broadcast %cst_39 : f32 to vector<2x1xf32>
    %75 = arith.divf %73, %74 : vector<2x1xf32>
    %76 = vector.broadcast %66 : vector<2x1xf32> to vector<2x32xf32>
    %77 = arith.subf %60, %76 : vector<2x32xf32>
    %cst_40 = arith.constant 9.99999974E-6 : f32
    %78 = vector.broadcast %cst_40 : f32 to vector<2x1xf32>
    %79 = arith.addf %75, %78 : vector<2x1xf32>
    %80 = math.rsqrt %79 : vector<2x1xf32>
    %81 = vector.broadcast %80 : vector<2x1xf32> to vector<2x32xf32>
    %82 = arith.mulf %77, %81 : vector<2x32xf32>
    %83 = vector.broadcast %61 : vector<1x32xf32> to vector<2x32xf32>
    %84 = arith.mulf %82, %83 : vector<2x32xf32>
    %85 = vector.broadcast %62 : vector<1x32xf32> to vector<2x32xf32>
    %86 = arith.addf %84, %85 : vector<2x32xf32>
    %cst_41 = arith.constant 5.000000e-01 : f32
    %87 = vector.broadcast %cst_41 : f32 to vector<2x32xf32>
    %88 = arith.mulf %87, %86 : vector<2x32xf32>
    %cst_42 = arith.constant 0.707106769 : f32
    %89 = vector.broadcast %cst_42 : f32 to vector<2x32xf32>
    %90 = arith.mulf %86, %89 : vector<2x32xf32>
    %cst_43 = arith.constant 0.000000e+00 : f32
    %91 = vector.broadcast %cst_43 : f32 to vector<2x32xf32>
    %92 = arith.cmpf oge, %90, %91 : vector<2x32xf32>
    %cst_44 = arith.constant 1.000000e+00 : f32
    %cst_45 = arith.constant -1.000000e+00 : f32
    %93 = vector.broadcast %cst_44 : f32 to vector<2x32xf32>
    %94 = vector.broadcast %cst_45 : f32 to vector<2x32xf32>
    %95 = arith.select %92, %93, %94 : vector<2x32xi1>, vector<2x32xf32>
    %96 = math.absf %90 : vector<2x32xf32>
    %cst_46 = arith.constant 0.327591091 : f32
    %97 = vector.broadcast %cst_46 : f32 to vector<2x32xf32>
    %98 = arith.mulf %97, %96 : vector<2x32xf32>
    %cst_47 = arith.constant 1.000000e+00 : f32
    %99 = vector.broadcast %cst_47 : f32 to vector<2x32xf32>
    %100 = arith.addf %99, %98 : vector<2x32xf32>
    %cst_48 = arith.constant 1.000000e+00 : f32
    %101 = vector.broadcast %cst_48 : f32 to vector<2x32xf32>
    %102 = arith.divf %101, %100 : vector<2x32xf32>
    %cst_49 = arith.constant 1.06140542 : f32
    %103 = vector.broadcast %cst_49 : f32 to vector<2x32xf32>
    %104 = arith.mulf %103, %102 : vector<2x32xf32>
    %cst_50 = arith.constant -1.45315206 : f32
    %105 = vector.broadcast %cst_50 : f32 to vector<2x32xf32>
    %106 = arith.addf %104, %105 : vector<2x32xf32>
    %107 = arith.mulf %106, %102 : vector<2x32xf32>
    %cst_51 = arith.constant 1.42141378 : f32
    %108 = vector.broadcast %cst_51 : f32 to vector<2x32xf32>
    %109 = arith.addf %107, %108 : vector<2x32xf32>
    %110 = arith.mulf %109, %102 : vector<2x32xf32>
    %cst_52 = arith.constant -0.284496725 : f32
    %111 = vector.broadcast %cst_52 : f32 to vector<2x32xf32>
    %112 = arith.addf %110, %111 : vector<2x32xf32>
    %113 = arith.mulf %112, %102 : vector<2x32xf32>
    %cst_53 = arith.constant 0.254829586 : f32
    %114 = vector.broadcast %cst_53 : f32 to vector<2x32xf32>
    %115 = arith.addf %113, %114 : vector<2x32xf32>
    %116 = arith.mulf %115, %102 : vector<2x32xf32>
    %cst_54 = arith.constant 0.000000e+00 : f32
    %117 = vector.broadcast %cst_54 : f32 to vector<2x32xf32>
    %118 = arith.subf %117, %96 : vector<2x32xf32>
    %119 = arith.mulf %118, %96 : vector<2x32xf32>
    %120 = math.exp %119 : vector<2x32xf32>
    %121 = arith.mulf %116, %120 : vector<2x32xf32>
    %cst_55 = arith.constant 1.000000e+00 : f32
    %122 = vector.broadcast %cst_55 : f32 to vector<2x32xf32>
    %123 = arith.subf %122, %121 : vector<2x32xf32>
    %124 = arith.mulf %95, %123 : vector<2x32xf32>
    %cst_56 = arith.constant 1.000000e+00 : f32
    %125 = vector.broadcast %cst_56 : f32 to vector<2x32xf32>
    %126 = arith.addf %125, %124 : vector<2x32xf32>
    %127 = arith.mulf %88, %126 : vector<2x32xf32>
    %c0_57 = arith.constant 0 : index
    %c0_58 = arith.constant 0 : index
    %128 = vector.load %arg9[%c0_57, %c0_58] : memref<32x32xf32, #tpu.memory_space<vmem>>, vector<32x32xf32>
    %cst_59 = arith.constant dense<0.000000e+00> : vector<2x32xf32>
    %129 = tpu.matmul %127, %128, %cst_59 {dimension_numbers = #tpu.dot_dimension_numbers<[1], [0], [0], [1], [0, 0, 1, 1], [], []>} : vector<2x32xf32>, vector<32x32xf32>, vector<2x32xf32> -> vector<2x32xf32>
    %c0_60 = arith.constant 0 : index
    %c0_61 = arith.constant 0 : index
    %130 = vector.load %arg10[%c0_60, %c0_61] : memref<1x32xf32, #tpu.memory_space<vmem>>, vector<1x32xf32>
    %131 = vector.broadcast %130 : vector<1x32xf32> to vector<2x32xf32>
    %132 = arith.addf %129, %131 : vector<2x32xf32>
    %133 = arith.addf %132, %86 : vector<2x32xf32>
    %c0_62 = arith.constant 0 : index
    %c0_63 = arith.constant 0 : index
    %134 = vector.load %arg11[%c0_62, %c0_63] : memref<1x32xf32, #tpu.memory_space<vmem>>, vector<1x32xf32>
    %c0_64 = arith.constant 0 : index
    %c0_65 = arith.constant 0 : index
    %135 = vector.load %arg12[%c0_64, %c0_65] : memref<1x32xf32, #tpu.memory_space<vmem>>, vector<1x32xf32>
    %cst_66 = arith.constant dense<0.000000e+00> : vector<2xf32>
    %136 = vector.multi_reduction <add>, %133, %cst_66 [1] : vector<2x32xf32> to vector<2xf32>
    %137 = vector.shape_cast %136 : vector<2xf32> to vector<2x1xf32>
    %cst_67 = arith.constant 3.200000e+01 : f32
    %138 = vector.broadcast %cst_67 : f32 to vector<2x1xf32>
    %139 = arith.divf %137, %138 : vector<2x1xf32>
    %140 = vector.broadcast %139 : vector<2x1xf32> to vector<2x32xf32>
    %141 = arith.subf %133, %140 : vector<2x32xf32>
    %142 = vector.broadcast %139 : vector<2x1xf32> to vector<2x32xf32>
    %143 = arith.subf %133, %142 : vector<2x32xf32>
    %144 = arith.mulf %141, %143 : vector<2x32xf32>
    %cst_68 = arith.constant dense<0.000000e+00> : vector<2xf32>
    %145 = vector.multi_reduction <add>, %144, %cst_68 [1] : vector<2x32xf32> to vector<2xf32>
    %146 = vector.shape_cast %145 : vector<2xf32> to vector<2x1xf32>
    %cst_69 = arith.constant 3.200000e+01 : f32
    %147 = vector.broadcast %cst_69 : f32 to vector<2x1xf32>
    %148 = arith.divf %146, %147 : vector<2x1xf32>
    %149 = vector.broadcast %139 : vector<2x1xf32> to vector<2x32xf32>
    %150 = arith.subf %133, %149 : vector<2x32xf32>
    %cst_70 = arith.constant 9.99999974E-6 : f32
    %151 = vector.broadcast %cst_70 : f32 to vector<2x1xf32>
    %152 = arith.addf %148, %151 : vector<2x1xf32>
    %153 = math.rsqrt %152 : vector<2x1xf32>
    %154 = vector.broadcast %153 : vector<2x1xf32> to vector<2x32xf32>
    %155 = arith.mulf %150, %154 : vector<2x32xf32>
    %156 = vector.broadcast %134 : vector<1x32xf32> to vector<2x32xf32>
    %157 = arith.mulf %155, %156 : vector<2x32xf32>
    %158 = vector.broadcast %135 : vector<1x32xf32> to vector<2x32xf32>
    %159 = arith.addf %157, %158 : vector<2x32xf32>
    %c0_71 = arith.constant 0 : index
    %c0_72 = arith.constant 0 : index
    %160 = vector.load %arg13[%c0_71, %c0_72] : memref<2x32xf32, #tpu.memory_space<vmem>>, vector<2x32xf32>
    tpu.vector_store %arg13[%c0_71, %c0_72], %159 {strides = array<i32>} : memref<2x32xf32, #tpu.memory_space<vmem>>, vector<2x32xf32>,
    return
  }
}

module attributes {stable_mosaic.version = 11 : i64} {
  func.func @_bert_layer_kernel(%arg0: memref<16x32xf32, #tpu.memory_space<vmem>>, %arg1: memref<2x8xf32, #tpu.memory_space<vmem>>, %arg2: memref<32x96xf32, #tpu.memory_space<vmem>>, %arg3: memref<1x96xf32, #tpu.memory_space<vmem>>, %arg4: memref<32x32xf32, #tpu.memory_space<vmem>>, %arg5: memref<1x32xf32, #tpu.memory_space<vmem>>, %arg6: memref<1x32xf32, #tpu.memory_space<vmem>>, %arg7: memref<1x32xf32, #tpu.memory_space<vmem>>, %arg8: memref<32x64xf32, #tpu.memory_space<vmem>>, %arg9: memref<1x64xf32, #tpu.memory_space<vmem>>, %arg10: memref<64x32xf32, #tpu.memory_space<vmem>>, %arg11: memref<1x32xf32, #tpu.memory_space<vmem>>, %arg12: memref<1x32xf32, #tpu.memory_space<vmem>>, %arg13: memref<1x32xf32, #tpu.memory_space<vmem>>, %arg14: memref<16x32xf32, #tpu.memory_space<vmem>>) attributes {dimension_semantics = [], scalar_prefetch = 0 : i64, scratch_operands = 0 : i64, tpu.core_type = #tpu.core_type<tc>} {
    %c0 = arith.constant 0 : index
    %c0_0 = arith.constant 0 : index
    %0 = vector.load %arg0[%c0, %c0_0] : memref<16x32xf32, #tpu.memory_space<vmem>>, vector<16x32xf32>
    %c0_1 = arith.constant 0 : index
    %c0_2 = arith.constant 0 : index
    %1 = vector.load %arg2[%c0_1, %c0_2] : memref<32x96xf32, #tpu.memory_space<vmem>>, vector<32x96xf32>
    %cst = arith.constant dense<0.000000e+00> : vector<16x96xf32>
    %2 = tpu.matmul %0, %1, %cst {dimension_numbers = #tpu.dot_dimension_numbers<[1], [0], [0], [1], [0, 0, 1, 1], [], []>} : vector<16x32xf32>, vector<32x96xf32>, vector<16x96xf32> -> vector<16x96xf32>
    %c0_3 = arith.constant 0 : index
    %c0_4 = arith.constant 0 : index
    %3 = vector.load %arg3[%c0_3, %c0_4] : memref<1x96xf32, #tpu.memory_space<vmem>>, vector<1x96xf32>
    %4 = vector.broadcast %3 : vector<1x96xf32> to vector<16x96xf32>
    %5 = arith.addf %2, %4 : vector<16x96xf32>
    %6 = vector.extract_strided_slice %5 {offsets = [0, 0], sizes = [16, 32], strides = [1, 1]} : vector<16x96xf32> to vector<16x32xf32>
    %7 = vector.extract_strided_slice %5 {offsets = [0, 32], sizes = [16, 32], strides = [1, 1]} : vector<16x96xf32> to vector<16x32xf32>
    %8 = vector.extract_strided_slice %5 {offsets = [0, 64], sizes = [16, 32], strides = [1, 1]} : vector<16x96xf32> to vector<16x32xf32>
    %c0_5 = arith.constant 0 : index
    %c0_6 = arith.constant 0 : index
    %9 = vector.load %arg1[%c0_5, %c0_6] : memref<2x8xf32, #tpu.memory_space<vmem>>, vector<1x8xf32>
    %10 = vector.extract_strided_slice %6 {offsets = [0, 0], sizes = [8, 16], strides = [1, 1]} : vector<16x32xf32> to vector<8x16xf32>
    %11 = vector.extract_strided_slice %7 {offsets = [0, 0], sizes = [8, 16], strides = [1, 1]} : vector<16x32xf32> to vector<8x16xf32>
    %12 = vector.extract_strided_slice %8 {offsets = [0, 0], sizes = [8, 16], strides = [1, 1]} : vector<16x32xf32> to vector<8x16xf32>
    %cst_7 = arith.constant dense<0.000000e+00> : vector<8x8xf32>
    %13 = tpu.matmul %10, %11, %cst_7 {dimension_numbers = #tpu.dot_dimension_numbers<[1], [1], [0], [0], [0, 0, 1, 0], [], []>} : vector<8x16xf32>, vector<8x16xf32>, vector<8x8xf32> -> vector<8x8xf32>
    %cst_8 = arith.constant 2.500000e-01 : f32
    %14 = vector.broadcast %cst_8 : f32 to vector<8x8xf32>
    %15 = arith.mulf %13, %14 : vector<8x8xf32>
    %16 = vector.broadcast %9 : vector<1x8xf32> to vector<8x8xf32>
    %17 = arith.addf %15, %16 : vector<8x8xf32>
    %cst_9 = arith.constant dense<0xFF800000> : vector<8xf32>
    %18 = vector.multi_reduction <maximumf>, %17, %cst_9 [1] : vector<8x8xf32> to vector<8xf32>
    %19 = vector.shape_cast %18 : vector<8xf32> to vector<8x1xf32>
    %20 = vector.broadcast %19 : vector<8x1xf32> to vector<8x8xf32>
    %21 = arith.subf %17, %20 : vector<8x8xf32>
    %22 = math.exp %21 : vector<8x8xf32>
    %cst_10 = arith.constant dense<0.000000e+00> : vector<8xf32>
    %23 = vector.multi_reduction <add>, %22, %cst_10 [1] : vector<8x8xf32> to vector<8xf32>
    %24 = vector.shape_cast %23 : vector<8xf32> to vector<8x1xf32>
    %25 = tpu.reciprocal %24 {approx = true} : vector<8x1xf32> -> vector<8x1xf32>
    %26 = vector.broadcast %25 : vector<8x1xf32> to vector<8x8xf32>
    %27 = arith.mulf %22, %26 : vector<8x8xf32>
    %cst_11 = arith.constant dense<0.000000e+00> : vector<8x16xf32>
    %28 = tpu.matmul %27, %12, %cst_11 {dimension_numbers = #tpu.dot_dimension_numbers<[1], [0], [0], [1], [0, 0, 1, 1], [], []>} : vector<8x8xf32>, vector<8x16xf32>, vector<8x16xf32> -> vector<8x16xf32>
    %29 = vector.extract_strided_slice %6 {offsets = [0, 16], sizes = [8, 16], strides = [1, 1]} : vector<16x32xf32> to vector<8x16xf32>
    %30 = vector.extract_strided_slice %7 {offsets = [0, 16], sizes = [8, 16], strides = [1, 1]} : vector<16x32xf32> to vector<8x16xf32>
    %31 = vector.extract_strided_slice %8 {offsets = [0, 16], sizes = [8, 16], strides = [1, 1]} : vector<16x32xf32> to vector<8x16xf32>
    %cst_12 = arith.constant dense<0.000000e+00> : vector<8x8xf32>
    %32 = tpu.matmul %29, %30, %cst_12 {dimension_numbers = #tpu.dot_dimension_numbers<[1], [1], [0], [0], [0, 0, 1, 0], [], []>} : vector<8x16xf32>, vector<8x16xf32>, vector<8x8xf32> -> vector<8x8xf32>
    %cst_13 = arith.constant 2.500000e-01 : f32
    %33 = vector.broadcast %cst_13 : f32 to vector<8x8xf32>
    %34 = arith.mulf %32, %33 : vector<8x8xf32>
    %35 = vector.broadcast %9 : vector<1x8xf32> to vector<8x8xf32>
    %36 = arith.addf %34, %35 : vector<8x8xf32>
    %cst_14 = arith.constant dense<0xFF800000> : vector<8xf32>
    %37 = vector.multi_reduction <maximumf>, %36, %cst_14 [1] : vector<8x8xf32> to vector<8xf32>
    %38 = vector.shape_cast %37 : vector<8xf32> to vector<8x1xf32>
    %39 = vector.broadcast %38 : vector<8x1xf32> to vector<8x8xf32>
    %40 = arith.subf %36, %39 : vector<8x8xf32>
    %41 = math.exp %40 : vector<8x8xf32>
    %cst_15 = arith.constant dense<0.000000e+00> : vector<8xf32>
    %42 = vector.multi_reduction <add>, %41, %cst_15 [1] : vector<8x8xf32> to vector<8xf32>
    %43 = vector.shape_cast %42 : vector<8xf32> to vector<8x1xf32>
    %44 = tpu.reciprocal %43 {approx = true} : vector<8x1xf32> -> vector<8x1xf32>
    %45 = vector.broadcast %44 : vector<8x1xf32> to vector<8x8xf32>
    %46 = arith.mulf %41, %45 : vector<8x8xf32>
    %cst_16 = arith.constant dense<0.000000e+00> : vector<8x16xf32>
    %47 = tpu.matmul %46, %31, %cst_16 {dimension_numbers = #tpu.dot_dimension_numbers<[1], [0], [0], [1], [0, 0, 1, 1], [], []>} : vector<8x8xf32>, vector<8x16xf32>, vector<8x16xf32> -> vector<8x16xf32>
    %48 = tpu.concatenate %28, %47 in 1 : vector<8x16xf32>, vector<8x16xf32> -> vector<8x32xf32>
    %c1 = arith.constant 1 : index
    %c0_17 = arith.constant 0 : index
    %49 = vector.load %arg1[%c1, %c0_17] : memref<2x8xf32, #tpu.memory_space<vmem>>, vector<1x8xf32>
    %50 = vector.extract_strided_slice %6 {offsets = [8, 0], sizes = [8, 16], strides = [1, 1]} : vector<16x32xf32> to vector<8x16xf32>
    %51 = vector.extract_strided_slice %7 {offsets = [8, 0], sizes = [8, 16], strides = [1, 1]} : vector<16x32xf32> to vector<8x16xf32>
    %52 = vector.extract_strided_slice %8 {offsets = [8, 0], sizes = [8, 16], strides = [1, 1]} : vector<16x32xf32> to vector<8x16xf32>
    %cst_18 = arith.constant dense<0.000000e+00> : vector<8x8xf32>
    %53 = tpu.matmul %50, %51, %cst_18 {dimension_numbers = #tpu.dot_dimension_numbers<[1], [1], [0], [0], [0, 0, 1, 0], [], []>} : vector<8x16xf32>, vector<8x16xf32>, vector<8x8xf32> -> vector<8x8xf32>
    %cst_19 = arith.constant 2.500000e-01 : f32
    %54 = vector.broadcast %cst_19 : f32 to vector<8x8xf32>
    %55 = arith.mulf %53, %54 : vector<8x8xf32>
    %56 = vector.broadcast %49 : vector<1x8xf32> to vector<8x8xf32>
    %57 = arith.addf %55, %56 : vector<8x8xf32>
    %cst_20 = arith.constant dense<0xFF800000> : vector<8xf32>
    %58 = vector.multi_reduction <maximumf>, %57, %cst_20 [1] : vector<8x8xf32> to vector<8xf32>
    %59 = vector.shape_cast %58 : vector<8xf32> to vector<8x1xf32>
    %60 = vector.broadcast %59 : vector<8x1xf32> to vector<8x8xf32>
    %61 = arith.subf %57, %60 : vector<8x8xf32>
    %62 = math.exp %61 : vector<8x8xf32>
    %cst_21 = arith.constant dense<0.000000e+00> : vector<8xf32>
    %63 = vector.multi_reduction <add>, %62, %cst_21 [1] : vector<8x8xf32> to vector<8xf32>
    %64 = vector.shape_cast %63 : vector<8xf32> to vector<8x1xf32>
    %65 = tpu.reciprocal %64 {approx = true} : vector<8x1xf32> -> vector<8x1xf32>
    %66 = vector.broadcast %65 : vector<8x1xf32> to vector<8x8xf32>
    %67 = arith.mulf %62, %66 : vector<8x8xf32>
    %cst_22 = arith.constant dense<0.000000e+00> : vector<8x16xf32>
    %68 = tpu.matmul %67, %52, %cst_22 {dimension_numbers = #tpu.dot_dimension_numbers<[1], [0], [0], [1], [0, 0, 1, 1], [], []>} : vector<8x8xf32>, vector<8x16xf32>, vector<8x16xf32> -> vector<8x16xf32>
    %69 = vector.extract_strided_slice %6 {offsets = [8, 16], sizes = [8, 16], strides = [1, 1]} : vector<16x32xf32> to vector<8x16xf32>
    %70 = vector.extract_strided_slice %7 {offsets = [8, 16], sizes = [8, 16], strides = [1, 1]} : vector<16x32xf32> to vector<8x16xf32>
    %71 = vector.extract_strided_slice %8 {offsets = [8, 16], sizes = [8, 16], strides = [1, 1]} : vector<16x32xf32> to vector<8x16xf32>
    %cst_23 = arith.constant dense<0.000000e+00> : vector<8x8xf32>
    %72 = tpu.matmul %69, %70, %cst_23 {dimension_numbers = #tpu.dot_dimension_numbers<[1], [1], [0], [0], [0, 0, 1, 0], [], []>} : vector<8x16xf32>, vector<8x16xf32>, vector<8x8xf32> -> vector<8x8xf32>
    %cst_24 = arith.constant 2.500000e-01 : f32
    %73 = vector.broadcast %cst_24 : f32 to vector<8x8xf32>
    %74 = arith.mulf %72, %73 : vector<8x8xf32>
    %75 = vector.broadcast %49 : vector<1x8xf32> to vector<8x8xf32>
    %76 = arith.addf %74, %75 : vector<8x8xf32>
    %cst_25 = arith.constant dense<0xFF800000> : vector<8xf32>
    %77 = vector.multi_reduction <maximumf>, %76, %cst_25 [1] : vector<8x8xf32> to vector<8xf32>
    %78 = vector.shape_cast %77 : vector<8xf32> to vector<8x1xf32>
    %79 = vector.broadcast %78 : vector<8x1xf32> to vector<8x8xf32>
    %80 = arith.subf %76, %79 : vector<8x8xf32>
    %81 = math.exp %80 : vector<8x8xf32>
    %cst_26 = arith.constant dense<0.000000e+00> : vector<8xf32>
    %82 = vector.multi_reduction <add>, %81, %cst_26 [1] : vector<8x8xf32> to vector<8xf32>
    %83 = vector.shape_cast %82 : vector<8xf32> to vector<8x1xf32>
    %84 = tpu.reciprocal %83 {approx = true} : vector<8x1xf32> -> vector<8x1xf32>
    %85 = vector.broadcast %84 : vector<8x1xf32> to vector<8x8xf32>
    %86 = arith.mulf %81, %85 : vector<8x8xf32>
    %cst_27 = arith.constant dense<0.000000e+00> : vector<8x16xf32>
    %87 = tpu.matmul %86, %71, %cst_27 {dimension_numbers = #tpu.dot_dimension_numbers<[1], [0], [0], [1], [0, 0, 1, 1], [], []>} : vector<8x8xf32>, vector<8x16xf32>, vector<8x16xf32> -> vector<8x16xf32>
    %88 = tpu.concatenate %68, %87 in 1 : vector<8x16xf32>, vector<8x16xf32> -> vector<8x32xf32>
    %89 = tpu.concatenate %48, %88 in 0 : vector<8x32xf32>, vector<8x32xf32> -> vector<16x32xf32>
    %c0_28 = arith.constant 0 : index
    %c0_29 = arith.constant 0 : index
    %90 = vector.load %arg4[%c0_28, %c0_29] : memref<32x32xf32, #tpu.memory_space<vmem>>, vector<32x32xf32>
    %cst_30 = arith.constant dense<0.000000e+00> : vector<16x32xf32>
    %91 = tpu.matmul %89, %90, %cst_30 {dimension_numbers = #tpu.dot_dimension_numbers<[1], [0], [0], [1], [0, 0, 1, 1], [], []>} : vector<16x32xf32>, vector<32x32xf32>, vector<16x32xf32> -> vector<16x32xf32>
    %c0_31 = arith.constant 0 : index
    %c0_32 = arith.constant 0 : index
    %92 = vector.load %arg5[%c0_31, %c0_32] : memref<1x32xf32, #tpu.memory_space<vmem>>, vector<1x32xf32>
    %93 = vector.broadcast %92 : vector<1x32xf32> to vector<16x32xf32>
    %94 = arith.addf %91, %93 : vector<16x32xf32>
    %95 = arith.addf %94, %0 : vector<16x32xf32>
    %c0_33 = arith.constant 0 : index
    %c0_34 = arith.constant 0 : index
    %96 = vector.load %arg6[%c0_33, %c0_34] : memref<1x32xf32, #tpu.memory_space<vmem>>, vector<1x32xf32>
    %c0_35 = arith.constant 0 : index
    %c0_36 = arith.constant 0 : index
    %97 = vector.load %arg7[%c0_35, %c0_36] : memref<1x32xf32, #tpu.memory_space<vmem>>, vector<1x32xf32>
    %cst_37 = arith.constant dense<0.000000e+00> : vector<16xf32>
    %98 = vector.multi_reduction <add>, %95, %cst_37 [1] : vector<16x32xf32> to vector<16xf32>
    %99 = vector.shape_cast %98 : vector<16xf32> to vector<16x1xf32>
    %cst_38 = arith.constant 3.200000e+01 : f32
    %100 = vector.broadcast %cst_38 : f32 to vector<16x1xf32>
    %101 = arith.divf %99, %100 : vector<16x1xf32>
    %102 = vector.broadcast %101 : vector<16x1xf32> to vector<16x32xf32>
    %103 = arith.subf %95, %102 : vector<16x32xf32>
    %104 = vector.broadcast %101 : vector<16x1xf32> to vector<16x32xf32>
    %105 = arith.subf %95, %104 : vector<16x32xf32>
    %106 = arith.mulf %103, %105 : vector<16x32xf32>
    %cst_39 = arith.constant dense<0.000000e+00> : vector<16xf32>
    %107 = vector.multi_reduction <add>, %106, %cst_39 [1] : vector<16x32xf32> to vector<16xf32>
    %108 = vector.shape_cast %107 : vector<16xf32> to vector<16x1xf32>
    %cst_40 = arith.constant 3.200000e+01 : f32
    %109 = vector.broadcast %cst_40 : f32 to vector<16x1xf32>
    %110 = arith.divf %108, %109 : vector<16x1xf32>
    %111 = vector.broadcast %101 : vector<16x1xf32> to vector<16x32xf32>
    %112 = arith.subf %95, %111 : vector<16x32xf32>
    %cst_41 = arith.constant 9.99999996E-13 : f32
    %113 = vector.broadcast %cst_41 : f32 to vector<16x1xf32>
    %114 = arith.addf %110, %113 : vector<16x1xf32>
    %115 = math.rsqrt %114 : vector<16x1xf32>
    %116 = vector.broadcast %115 : vector<16x1xf32> to vector<16x32xf32>
    %117 = arith.mulf %112, %116 : vector<16x32xf32>
    %118 = vector.broadcast %96 : vector<1x32xf32> to vector<16x32xf32>
    %119 = arith.mulf %117, %118 : vector<16x32xf32>
    %120 = vector.broadcast %97 : vector<1x32xf32> to vector<16x32xf32>
    %121 = arith.addf %119, %120 : vector<16x32xf32>
    %c0_42 = arith.constant 0 : index
    %c0_43 = arith.constant 0 : index
    %122 = vector.load %arg8[%c0_42, %c0_43] : memref<32x64xf32, #tpu.memory_space<vmem>>, vector<32x64xf32>
    %cst_44 = arith.constant dense<0.000000e+00> : vector<16x64xf32>
    %123 = tpu.matmul %121, %122, %cst_44 {dimension_numbers = #tpu.dot_dimension_numbers<[1], [0], [0], [1], [0, 0, 1, 1], [], []>} : vector<16x32xf32>, vector<32x64xf32>, vector<16x64xf32> -> vector<16x64xf32>
    %c0_45 = arith.constant 0 : index
    %c0_46 = arith.constant 0 : index
    %124 = vector.load %arg9[%c0_45, %c0_46] : memref<1x64xf32, #tpu.memory_space<vmem>>, vector<1x64xf32>
    %125 = vector.broadcast %124 : vector<1x64xf32> to vector<16x64xf32>
    %126 = arith.addf %123, %125 : vector<16x64xf32>
    %cst_47 = arith.constant 5.000000e-01 : f32
    %127 = vector.broadcast %cst_47 : f32 to vector<16x64xf32>
    %128 = arith.mulf %127, %126 : vector<16x64xf32>
    %cst_48 = arith.constant 0.707106769 : f32
    %129 = vector.broadcast %cst_48 : f32 to vector<16x64xf32>
    %130 = arith.mulf %126, %129 : vector<16x64xf32>
    %cst_49 = arith.constant 0.000000e+00 : f32
    %131 = vector.broadcast %cst_49 : f32 to vector<16x64xf32>
    %132 = arith.cmpf oge, %130, %131 : vector<16x64xf32>
    %cst_50 = arith.constant 1.000000e+00 : f32
    %cst_51 = arith.constant -1.000000e+00 : f32
    %133 = vector.broadcast %cst_50 : f32 to vector<16x64xf32>
    %134 = vector.broadcast %cst_51 : f32 to vector<16x64xf32>
    %135 = arith.select %132, %133, %134 : vector<16x64xi1>, vector<16x64xf32>
    %136 = math.absf %130 : vector<16x64xf32>
    %cst_52 = arith.constant 0.327591091 : f32
    %137 = vector.broadcast %cst_52 : f32 to vector<16x64xf32>
    %138 = arith.mulf %137, %136 : vector<16x64xf32>
    %cst_53 = arith.constant 1.000000e+00 : f32
    %139 = vector.broadcast %cst_53 : f32 to vector<16x64xf32>
    %140 = arith.addf %139, %138 : vector<16x64xf32>
    %cst_54 = arith.constant 1.000000e+00 : f32
    %141 = vector.broadcast %cst_54 : f32 to vector<16x64xf32>
    %142 = arith.divf %141, %140 : vector<16x64xf32>
    %cst_55 = arith.constant 1.06140542 : f32
    %143 = vector.broadcast %cst_55 : f32 to vector<16x64xf32>
    %144 = arith.mulf %143, %142 : vector<16x64xf32>
    %cst_56 = arith.constant -1.45315206 : f32
    %145 = vector.broadcast %cst_56 : f32 to vector<16x64xf32>
    %146 = arith.addf %144, %145 : vector<16x64xf32>
    %147 = arith.mulf %146, %142 : vector<16x64xf32>
    %cst_57 = arith.constant 1.42141378 : f32
    %148 = vector.broadcast %cst_57 : f32 to vector<16x64xf32>
    %149 = arith.addf %147, %148 : vector<16x64xf32>
    %150 = arith.mulf %149, %142 : vector<16x64xf32>
    %cst_58 = arith.constant -0.284496725 : f32
    %151 = vector.broadcast %cst_58 : f32 to vector<16x64xf32>
    %152 = arith.addf %150, %151 : vector<16x64xf32>
    %153 = arith.mulf %152, %142 : vector<16x64xf32>
    %cst_59 = arith.constant 0.254829586 : f32
    %154 = vector.broadcast %cst_59 : f32 to vector<16x64xf32>
    %155 = arith.addf %153, %154 : vector<16x64xf32>
    %156 = arith.mulf %155, %142 : vector<16x64xf32>
    %cst_60 = arith.constant 0.000000e+00 : f32
    %157 = vector.broadcast %cst_60 : f32 to vector<16x64xf32>
    %158 = arith.subf %157, %136 : vector<16x64xf32>
    %159 = arith.mulf %158, %136 : vector<16x64xf32>
    %160 = math.exp %159 : vector<16x64xf32>
    %161 = arith.mulf %156, %160 : vector<16x64xf32>
    %cst_61 = arith.constant 1.000000e+00 : f32
    %162 = vector.broadcast %cst_61 : f32 to vector<16x64xf32>
    %163 = arith.subf %162, %161 : vector<16x64xf32>
    %164 = arith.mulf %135, %163 : vector<16x64xf32>
    %cst_62 = arith.constant 1.000000e+00 : f32
    %165 = vector.broadcast %cst_62 : f32 to vector<16x64xf32>
    %166 = arith.addf %165, %164 : vector<16x64xf32>
    %167 = arith.mulf %128, %166 : vector<16x64xf32>
    %c0_63 = arith.constant 0 : index
    %c0_64 = arith.constant 0 : index
    %168 = vector.load %arg10[%c0_63, %c0_64] : memref<64x32xf32, #tpu.memory_space<vmem>>, vector<64x32xf32>
    %cst_65 = arith.constant dense<0.000000e+00> : vector<16x32xf32>
    %169 = tpu.matmul %167, %168, %cst_65 {dimension_numbers = #tpu.dot_dimension_numbers<[1], [0], [0], [1], [0, 0, 1, 1], [], []>} : vector<16x64xf32>, vector<64x32xf32>, vector<16x32xf32> -> vector<16x32xf32>
    %c0_66 = arith.constant 0 : index
    %c0_67 = arith.constant 0 : index
    %170 = vector.load %arg11[%c0_66, %c0_67] : memref<1x32xf32, #tpu.memory_space<vmem>>, vector<1x32xf32>
    %171 = vector.broadcast %170 : vector<1x32xf32> to vector<16x32xf32>
    %172 = arith.addf %169, %171 : vector<16x32xf32>
    %173 = arith.addf %172, %121 : vector<16x32xf32>
    %c0_68 = arith.constant 0 : index
    %c0_69 = arith.constant 0 : index
    %174 = vector.load %arg12[%c0_68, %c0_69] : memref<1x32xf32, #tpu.memory_space<vmem>>, vector<1x32xf32>
    %c0_70 = arith.constant 0 : index
    %c0_71 = arith.constant 0 : index
    %175 = vector.load %arg13[%c0_70, %c0_71] : memref<1x32xf32, #tpu.memory_space<vmem>>, vector<1x32xf32>
    %cst_72 = arith.constant dense<0.000000e+00> : vector<16xf32>
    %176 = vector.multi_reduction <add>, %173, %cst_72 [1] : vector<16x32xf32> to vector<16xf32>
    %177 = vector.shape_cast %176 : vector<16xf32> to vector<16x1xf32>
    %cst_73 = arith.constant 3.200000e+01 : f32
    %178 = vector.broadcast %cst_73 : f32 to vector<16x1xf32>
    %179 = arith.divf %177, %178 : vector<16x1xf32>
    %180 = vector.broadcast %179 : vector<16x1xf32> to vector<16x32xf32>
    %181 = arith.subf %173, %180 : vector<16x32xf32>
    %182 = vector.broadcast %179 : vector<16x1xf32> to vector<16x32xf32>
    %183 = arith.subf %173, %182 : vector<16x32xf32>
    %184 = arith.mulf %181, %183 : vector<16x32xf32>
    %cst_74 = arith.constant dense<0.000000e+00> : vector<16xf32>
    %185 = vector.multi_reduction <add>, %184, %cst_74 [1] : vector<16x32xf32> to vector<16xf32>
    %186 = vector.shape_cast %185 : vector<16xf32> to vector<16x1xf32>
    %cst_75 = arith.constant 3.200000e+01 : f32
    %187 = vector.broadcast %cst_75 : f32 to vector<16x1xf32>
    %188 = arith.divf %186, %187 : vector<16x1xf32>
    %189 = vector.broadcast %179 : vector<16x1xf32> to vector<16x32xf32>
    %190 = arith.subf %173, %189 : vector<16x32xf32>
    %cst_76 = arith.constant 9.99999996E-13 : f32
    %191 = vector.broadcast %cst_76 : f32 to vector<16x1xf32>
    %192 = arith.addf %188, %191 : vector<16x1xf32>
    %193 = math.rsqrt %192 : vector<16x1xf32>
    %194 = vector.broadcast %193 : vector<16x1xf32> to vector<16x32xf32>
    %195 = arith.mulf %190, %194 : vector<16x32xf32>
    %196 = vector.broadcast %174 : vector<1x32xf32> to vector<16x32xf32>
    %197 = arith.mulf %195, %196 : vector<16x32xf32>
    %198 = vector.broadcast %175 : vector<1x32xf32> to vector<16x32xf32>
    %199 = arith.addf %197, %198 : vector<16x32xf32>
    %c0_77 = arith.constant 0 : index
    %c0_78 = arith.constant 0 : index
    %200 = vector.load %arg14[%c0_77, %c0_78] : memref<16x32xf32, #tpu.memory_space<vmem>>, vector<16x32xf32>
    tpu.vector_store %arg14[%c0_77, %c0_78], %199 {strides = array<i32>} : memref<16x32xf32, #tpu.memory_space<vmem>>, vector<16x32xf32>,
    return
  }
}

</mosaic_0001>

<bundles_post_ra>
// kernel: text_encoder_bert_forward.4
= control target key start
LH: loop header
LB: loop body
LE: loop exit
PB: predicated region body
PF: predicated region fallthrough
CT: control target
= control target key end

     0   :  { %vm18_vm0 = vcmask 261120   ;;  %s118_s0 = inlined_call_operand.vmem [shape: f32[16,32], index: 0, kind: input, shape index: {}]   ;;  %s119_s1 = inlined_call_operand.vmem [shape: f32[1,32], index: 1, kind: input, shape index: {}]   ;;  %s120_s2 = inlined_call_operand.vmem [shape: f32[1,32], index: 2, kind: input, shape index: {}]   ;;  %s121_s3 = inlined_call_operand.vmem [shape: f32[16,32], index: 3, kind: output, shape index: {}]  }
   0x1   :  { %v14_v0 = vld [vmem:[%s118_s0] sm:$0xff]  ;;  %v15_v1 = vld [vmem:[%s118_s0 + $0x8] sm:$0xff] }
   0x2   :  { %v19_v2 = vsel %vm18_vm0, %v14_v0, 0.0  ;;  %v22_v3 = vsel %vm18_vm0, %v15_v1, 0.0  ;;  %v68_v21 = vld [vmem:[%s119_s1] ss:$0 sm:$0xff] }
   0x3   :  { %20 = vadd.xlane.f32.xlu0 %v19_v2  ;;  %v69_v23 = vld [vmem:[%s120_s2] ss:$0 sm:$0xff] }
   0x7   :  { %23 = vadd.xlane.f32.xlu0 %v22_v3 }
  0x90   :  { %v21_v4 = vpop.xlane.xlu0 %20 }
  0x91   :  { %v26_v5 = vmul.f32 0.03125, %v21_v4 }
  0x93   :  { %v28_v6 = vsub.f32 %v14_v0, %v26_v5 }
  0x94   :  { %v24_v7 = vpop.xlane.xlu0 %23 }
  0x95   :  { %v27_v8 = vmul.f32 0.03125, %v24_v7  ;;  %v30_v9 = vmul.f32 %v28_v6, %v28_v6 }
  0x97   :  { %v29_v10 = vsub.f32 %v15_v1, %v27_v8  ;;  %v32_v11 = vsel %vm18_vm0, %v30_v9, 0.0 }
  0x98   :  { %33 = vadd.xlane.f32.xlu1 %v32_v11 }
  0x99   :  { %v31_v12 = vmul.f32 %v29_v10, %v29_v10 }
  0x9b   :  { %v35_v13 = vsel %vm18_vm0, %v31_v12, 0.0 }
  0x9c   :  { %36 = vadd.xlane.f32.xlu1 %v35_v13 }
 0x125   :  { %v34_v14 = vpop.xlane.xlu1 %33 }
 0x126   :  { %v38_v15 = vmul.f32 0.03125, %v34_v14 }
 0x128   :  { %v40_v16 = vadd.f32 1e-12, %v38_v15 }
 0x129   :  { %v37_v17 = vpop.xlane.xlu1 %36 }
 0x12a   :  { %70 = vrsqrt.f32 %v40_v16  ;;  %v39_v18 = vmul.f32 0.03125, %v37_v17 }
 0x12c   :  { %v41_v19 = vadd.f32 1e-12, %v39_v18 }
 0x12e   :  { %72 = vrsqrt.f32 %v41_v19 }
 0x134   :  { %v71_v20 = vpop.eup %70 }
 0x135   :  { %v44_v22 = vmul.f32 %v71_v20, %v28_v6 }
 0x137   :  { %v52_v24 = vmul.f32 %v68_v21, %v44_v22 }
 0x138   :  { %v73_v25 = vpop.eup %72 }
 0x139   :  { %v60_v26 = vadd.f32 %v69_v23, %v52_v24  ;;  %v45_v27 = vmul.f32 %v73_v25, %v29_v10 }
 0x13b   :  { %62 = vst.msk [vmem:[%s121_s3] sm:$0xff] %vm18_vm0, %v60_v26  ;;  %v53_v28 = vmul.f32 %v68_v21, %v45_v27 }
 0x13d   :  { %v61_v29 = vadd.f32 %v69_v23, %v53_v28 }
 0x13f   :  { %63 = vst.msk [vmem:[%s121_s3 + $0x8] sm:$0xff] %vm18_vm0, %v61_v29 }

// kernel: text_encoder_bert_forward.7
= control target key start
LH: loop header
LB: loop body
LE: loop exit
PB: predicated region body
PF: predicated region fallthrough
CT: control target
= control target key end

     0   :  { %v664_v3 = vmov 0.0|0.0   ;;  %vm665_vm0 = vmmov 0   ;;  %v666_v6 = vmov 0.0   ;;  %s852_s0 = inlined_call_operand.vmem [shape: f32[16,32], index: 0, kind: input, shape index: {}]   ;;  %s853_s1 = inlined_call_operand.vmem [shape: f32[32,32], index: 1, kind: input, shape index: {}]   ;;  %s854_s2 = inlined_call_operand.vmem [shape: f32[1,32], index: 2, kind: input, shape index: {}]   ;;  %s855_s3 = inlined_call_operand.vmem [shape: f32[32,32], index: 3, kind: input, shape index: {}]   ;;  %s856_s4 = inlined_call_operand.vmem [shape: f32[1,32], index: 4, kind: input, shape index: {}]   ;;  %s857_s5 = inlined_call_operand.vmem [shape: f32[32,32], index: 5, kind: input, shape index: {}]   ;;  %s858_s6 = inlined_call_operand.vmem [shape: f32[1,32], index: 6, kind: input, shape index: {}]   ;;  %s859_s7 = inlined_call_operand.vmem [shape: f32[1,32], index: 7, kind: input, shape index: {}]   ;;  %s860_s8 = inlined_call_operand.vmem [shape: f32[1,32], index: 8, kind: input, shape index: {}]   ;;  %s861_s9 = inlined_call_operand.vmem [shape: f32[32,32], index: 9, kind: input, shape index: {}]   ;;  %s862_s10 = inlined_call_operand.vmem [shape: f32[1,32], index: 10, kind: input, shape index: {}]   ;;  %s863_s11 = inlined_call_operand.vmem [shape: f32[1,32], index: 11, kind: input, shape index: {}]   ;;  %s864_s12 = inlined_call_operand.vmem [shape: f32[1,32], index: 12, kind: input, shape index: {}]   ;;  %s865_s13 = inlined_call_operand.hbm [shape: f32[2,32], index: 13, kind: output, shape index: {}]  }
   0x1   :  { %v52_v0 = vld [vmem:[%s853_s1] sm:$0xff]  ;;  %v53_v1 = vld [vmem:[%s853_s1 + $0x8] sm:$0xff]  ;;  %v54_v2 = vld [vmem:[%s853_s1 + $0x10] sm:$0xff]  ;;  %597 = vmatprep.subr.bf16.mxu0 %v664_v3  ;;  %561 = vmatprep.mubr.msk.f32.mxu0 %vm665_vm0, %v666_v6 }
   0x2   :  { %v598_v4 = vpack.c.bf16 %v53_v1, %v52_v0  ;;  %v55_v5 = vld [vmem:[%s853_s1 + $0x18] sm:$0xff]  ;;  %v46_v7 = vld [vmem:[%s852_s0 + $0x8] sm:$0x1]  ;;  %603 = vmatprep.subr.bf16.mxu1 %v664_v3  ;;  %572 = vmatprep.mubr.msk.f32.mxu1 %vm665_vm0, %v666_v6 }
   0x3   :  { %18 = vsyncpa [#allocation3], 0  ;;  %v601_v8 = vpack.c.bf16 %v55_v5, %v54_v2  ;;  %v48_v9 = vrot.slane %v46_v7, 7  ;;  %v45_v10 = vld [vmem:[%s852_s0] sm:$0x1]  ;;  %vm50_vm1 = vcmask 1040384  }
   0x4   :  { %599 = vmatpush3.bf16.msra.mxu0 %v598_v4  ;;  %vm63_vm2 = vcmask 261120   ;;  %v138_v12 = vld [vmem:[%s855_s3] sm:$0xff]  ;;  %v139_v13 = vld [vmem:[%s855_s3 + $0x8] sm:$0xff]  ;;  %v140_v14 = vld [vmem:[%s855_s3 + $0x10] sm:$0xff]  ;;  %v667_v53 = vmov -1.0   ;;  %vm336_vm4 = vcmask 254976  }
   0x5   :  { %600 = vmatprep.subr.bf16.mxu0 %v664_v3  ;;  %v51_v11 = vsel %vm50_vm1, %v45_v10, %v48_v9  ;;  %v604_v15 = vpack.c.bf16 %v139_v13, %v138_v12  ;;  %v141_v16 = vld [vmem:[%s855_s3 + $0x18] sm:$0xff]  ;;  %v521_v18 = vld [vmem:[%s854_s2] ss:$0 sm:$0xff]  ;;  %v250_v24 = vld [vmem:[%s857_s5 + $0x8] sm:$0xff]  ;;  %s668_s29 = smov [#allocation2]  }
   0x6   :  { %v607_v17 = vpack.c.bf16 %v141_v16, %v140_v14  ;;  %v249_v23 = vld [vmem:[%s857_s5] sm:$0xff]  ;;  %v251_v26 = vld [vmem:[%s857_s5 + $0x10] sm:$0xff]  ;;  %v252_v27 = vld [vmem:[%s857_s5 + $0x18] sm:$0xff]  ;;  %s513_s30 = sshll.u32 %s668_s29, 4  ;;  %s514_s30 = int_to_ptr.vmem [resolvable:$true] %s513_s30 }
   0x7   :  { %605 = vmatpush3.bf16.msra.mxu1 %v604_v15  ;;  %v610_v25 = vpack.c.bf16 %v250_v24, %v249_v23  ;;  %v613_v28 = vpack.c.bf16 %v252_v27, %v251_v26  ;;  %v523_v29 = vld [vmem:[%s856_s4] ss:$0 sm:$0xff]  ;;  %v394_v9 = vld [vmem:[%s861_s9 + $0x10] sm:$0xff]  ;;  %s640_s2 = scalar_lea.vmem %s514_s30, 32  ;;  %p645_p1 = scmp.lt.s32.totalorder %s514_s30, %s514_s30 }
   0x8   :  { %602 = vmatpush3.bf16.msra.mxu0 %v601_v8  ;;  %606 = vmatprep.subr.bf16.mxu1 %v664_v3  ;;  %v525_v59 = vld [vmem:[%s858_s6] ss:$0 sm:$0xff]  ;;  %v393_v8 = vld [vmem:[%s861_s9 + $0x8] sm:$0xff]  ;;  %p641_p0 = scmp.ne.s32.totalorder %s514_s30, %s640_s2  ;;  %p646_p2 = scmp.lt.s32.totalorder %s640_s2, %s640_s2 }
   0x9   :  { %609 = vmatprep.subr.bf16.mxu0 %v664_v3  ;;  %v392_v7 = vld [vmem:[%s861_s9] sm:$0xff] }
   0xa   :  { %v616_v10 = vpack.c.bf16 %v393_v8, %v392_v7  ;;  %p647_p3 = por %p646_p2, %p645_p1 }
   0xb   :  { %562 = vmatmul.mubr.msk.f32.vlgmr.msra.gmra.mrb[0].mxu0 %vm63_vm2, %v51_v11  ;;  %608 = vmatpush3.bf16.msra.mxu1 %v607_v17  ;;  %v395_v11 = vld [vmem:[%s861_s9 + $0x18] sm:$0xff]  ;;  %v527_v17 = vld [vmem:[%s859_s7] ss:$0 sm:$0xff] }
   0xc   :  { %583 = vmatprep.mubr.msk.f32.mxu0 %vm665_vm0, %v666_v6  ;;  %615 = vmatprep.subr.bf16.mxu1 %v664_v3  ;;  %v619_v12 = vpack.c.bf16 %v395_v11, %v394_v9  ;;  %p648_p4 = pnand %p647_p3, %p641_p0 }
   0xd   :  { %611 = vmatpush3.bf16.msra.mxu0 %v610_v25 }
   0xe   :  { %612 = vmatprep.subr.bf16.mxu0 %v664_v3 }
  0x11   :  { %614 = vmatpush3.bf16.msra.mxu0 %v613_v28 }
  0xde   :  { %v133_v19 = vpop.f32.mrb[0].mxu0 }
  0xdf   :  { %v134_v20 = vadd.f32 %v521_v18, %v133_v19  ;;  %v563_v21 = vpop.f32.mrb[1].mxu0  ;;  %v528_v19 = vld [vmem:[%s860_s8] ss:$0 sm:$0xff] }
  0xe1   :  { %626 = vtanh.f32 %v134_v20 }
  0xeb   :  { %v627_v22 = vpop.eup %626 }
  0xec   :  { %573 = vmatmul.mubr.msk.f32.vlgmr.msra.gmra.mrb[0].mxu1 %vm63_vm2, %v627_v22 }
  0xed   :  { %594 = vmatprep.mubr.msk.f32.mxu1 %vm665_vm0, %v666_v6  ;;  %617 = vmatpush3.bf16.msra.mxu1 %v616_v10 }
  0xee   :  { %618 = vmatprep.subr.bf16.mxu1 %v664_v3 }
  0xf1   :  { %620 = vmatpush3.bf16.msra.mxu1 %v619_v12 }
 0x1bf   :  { %v218_v30 = vpop.f32.mrb[0].mxu1 }
 0x1c0   :  { %v219_v31 = vadd.f32 %v523_v29, %v218_v30  ;;  %v574_v32 = vpop.f32.mrb[1].mxu1 }
 0x1c2   :  { %v223_v33 = vmul.f32 0.70710677, %v219_v31  ;;  %v222_v56 = vmul.f32 0.5, %v219_v31 }
 0x1c4   :  { %v226_v34 = vand.u32 2147483647, %v223_v33  ;;  %vm224_vm3 = vcmp.ge.f32.partialorder %v223_v33, 0.0 }
 0x1c5   :  { %v225_v54 = vsel %vm224_vm3, 1.0, %v667_v53 }
 0x1c6   :  { %v227_v35 = vmul.f32 0.3275911, %v226_v34  ;;  %v240_v37 = vsub.f32 0.0, %v226_v34 }
 0x1c8   :  { %v228_v36 = vadd.f32 1.0, %v227_v35  ;;  %v241_v39 = vmul.f32 %v240_v37, %v226_v34 }
 0x1ca   :  { %628 = vrcp.f32 %v228_v36  ;;  %v242_v42 = vmul.f32 1.442695, %v241_v39 }
 0x1cc   :  { %630 = vpow2.f32 %v242_v42 }
 0x1d4   :  { %v629_v38 = vpop.eup %628 }
 0x1d5   :  { %v231_v40 = vmul.f32 1.0614054, %v629_v38 }
 0x1d6   :  { %v631_v50 = vpop.eup %630 }
 0x1d7   :  { %v232_v41 = vadd.f32 -1.4531521, %v231_v40 }
 0x1d9   :  { %v233_v43 = vmul.f32 %v629_v38, %v232_v41 }
 0x1db   :  { %v234_v44 = vadd.f32 1.4214138, %v233_v43 }
 0x1dd   :  { %v235_v45 = vmul.f32 %v629_v38, %v234_v44 }
 0x1df   :  { %v236_v46 = vadd.f32 -0.28449672, %v235_v45 }
 0x1e1   :  { %v237_v47 = vmul.f32 %v629_v38, %v236_v46  ;;  %v529_v46 = vld [vmem:[%s862_s10] ss:$0 sm:$0xff] }
 0x1e3   :  { %v238_v48 = vadd.f32 0.2548296, %v237_v47 }
 0x1e5   :  { %v239_v49 = vmul.f32 %v629_v38, %v238_v48 }
 0x1e7   :  { %v244_v51 = vmul.f32 %v631_v50, %v239_v49 }
 0x1e9   :  { %v245_v52 = vsub.f32 1.0, %v244_v51 }
 0x1eb   :  { %v246_v55 = vmul.f32 %v245_v52, %v225_v54 }
 0x1ed   :  { %v247_v57 = vadd.f32 1.0, %v246_v55 }
 0x1ef   :  { %v248_v58 = vmul.f32 %v247_v57, %v222_v56 }
 0x1f1   :  { %584 = vmatmul.mubr.msk.f32.vlgmr.msra.gmra.mrb[2].mxu0 %vm63_vm2, %v248_v58 }
 0x2c4   :  { %v329_v60 = vpop.f32.mrb[2].mxu0 }
 0x2c5   :  { %v330_v61 = vadd.f32 %v525_v59, %v329_v60  ;;  %v585_v62 = vpop.f32.mrb[3].mxu0 }
 0x2c7   :  { %v333_v63 = vadd.f32 %v330_v61, %v219_v31  ;;  %v531_v61 = vld [vmem:[%s863_s11] ss:$0 sm:$0xff] }
 0x2c9   :  { %v337_v0 = vsel %vm336_vm4, %v333_v63, 0.0 }
 0x2ca   :  { %338 = vadd.xlane.f32.xlu0 %v337_v0 }
 0x357   :  { %v339_v1 = vpop.xlane.xlu0 %338 }
 0x358   :  { %v341_v2 = vmul.f32 0.03125, %v339_v1 }
 0x35a   :  { %v342_v4 = vsub.f32 %v333_v63, %v341_v2  ;;  %v532_v63 = vld [vmem:[%s864_s12] ss:$0 sm:$0xff] }
 0x35c   :  { %v343_v5 = vmul.f32 %v342_v4, %v342_v4 }
 0x35e   :  { %v344_v6 = vsel %vm336_vm4, %v343_v5, 0.0 }
 0x35f   :  { %345 = vadd.xlane.f32.xlu0 %v344_v6 }
 0x3ec   :  { %v346_v13 = vpop.xlane.xlu0 %345 }
 0x3ed   :  { %v347_v14 = vmul.f32 0.03125, %v346_v13 }
 0x3ef   :  { %v348_v15 = vadd.f32 1e-05, %v347_v14 }
 0x3f1   :  { %632 = vrsqrt.f32 %v348_v15 }
 0x3fb   :  { %v633_v16 = vpop.eup %632 }
 0x3fc   :  { %v350_v18 = vmul.f32 %v633_v16, %v342_v4 }
 0x3fe   :  { %v357_v20 = vmul.f32 %v527_v17, %v350_v18 }
 0x400   :  { %v364_v21 = vadd.f32 %v528_v19, %v357_v20 }
 0x402   :  { %v366_v22 = vmul.f32 0.70710677, %v364_v21  ;;  %v365_v43 = vmul.f32 0.5, %v364_v21 }
 0x404   :  { %v369_v23 = vand.u32 2147483647, %v366_v22  ;;  %vm367_vm5 = vcmp.ge.f32.partialorder %v366_v22, 0.0 }
 0x405   :  { %v368_v41 = vsel %vm367_vm5, 1.0, %v667_v53 }
 0x406   :  { %v370_v3 = vmul.f32 0.3275911, %v369_v23  ;;  %v383_v25 = vsub.f32 0.0, %v369_v23 }
 0x408   :  { %v371_v24 = vadd.f32 1.0, %v370_v3  ;;  %v384_v27 = vmul.f32 %v383_v25, %v369_v23 }
 0x40a   :  { %634 = vrcp.f32 %v371_v24  ;;  %v385_v30 = vmul.f32 1.442695, %v384_v27 }
 0x40c   :  { %636 = vpow2.f32 %v385_v30 }
 0x414   :  { %v635_v26 = vpop.eup %634 }
 0x415   :  { %v374_v28 = vmul.f32 1.0614054, %v635_v26 }
 0x416   :  { %v637_v38 = vpop.eup %636 }
 0x417   :  { %v375_v29 = vadd.f32 -1.4531521, %v374_v28 }
 0x419   :  { %v376_v31 = vmul.f32 %v635_v26, %v375_v29 }
 0x41b   :  { %v377_v32 = vadd.f32 1.4214138, %v376_v31 }
 0x41d   :  { %v378_v33 = vmul.f32 %v635_v26, %v377_v32 }
 0x41f   :  { %v379_v34 = vadd.f32 -0.28449672, %v378_v33 }
 0x421   :  { %v380_v35 = vmul.f32 %v635_v26, %v379_v34 }
 0x423   :  { %v381_v36 = vadd.f32 0.2548296, %v380_v35 }
 0x425   :  { %v382_v37 = vmul.f32 %v635_v26, %v381_v36 }
 0x427   :  { %v387_v39 = vmul.f32 %v637_v38, %v382_v37 }
 0x429   :  { %v388_v40 = vsub.f32 1.0, %v387_v39 }
 0x42b   :  { %v389_v42 = vmul.f32 %v388_v40, %v368_v41 }
 0x42d   :  { %v390_v44 = vadd.f32 1.0, %v389_v42 }
 0x42f   :  { %v391_v45 = vmul.f32 %v390_v44, %v365_v43 }
 0x431   :  { %595 = vmatmul.mubr.msk.f32.vlgmr.msra.gmra.mrb[2].mxu1 %vm63_vm2, %v391_v45 }
 0x504   :  { %v472_v47 = vpop.f32.mrb[2].mxu1 }
 0x505   :  { %v473_v48 = vadd.f32 %v529_v46, %v472_v47  ;;  %v596_v49 = vpop.f32.mrb[3].mxu1 }
 0x507   :  { %v476_v50 = vadd.f32 %v473_v48, %v364_v21 }
 0x509   :  { %v479_v51 = vsel %vm336_vm4, %v476_v50, 0.0 }
 0x50a   :  { %480 = vadd.xlane.f32.xlu1 %v479_v51 }
 0x597   :  { %v481_v52 = vpop.xlane.xlu1 %480 }
 0x598   :  { %v482_v54 = vmul.f32 0.03125, %v481_v52 }
 0x59a   :  { %v483_v53 = vsub.f32 %v476_v50, %v482_v54 }
 0x59c   :  { %v484_v55 = vmul.f32 %v483_v53, %v483_v53 }
 0x59e   :  { %v485_v56 = vsel %vm336_vm4, %v484_v55, 0.0 }
 0x59f   :  { %486 = vadd.xlane.f32.xlu1 %v485_v56 }
 0x62c   :  { %v487_v57 = vpop.xlane.xlu1 %486 }
 0x62d   :  { %v488_v58 = vmul.f32 0.03125, %v487_v57 }
 0x62f   :  { %v489_v59 = vadd.f32 1e-05, %v488_v58 }
 0x631   :  { %638 = vrsqrt.f32 %v489_v59 }
 0x63b   :  { %v639_v60 = vpop.eup %638 }
 0x63c   :  { %v491_v62 = vmul.f32 %v639_v60, %v483_v53 }
 0x63e   :  { %v498_v0 = vmul.f32 %v531_v61, %v491_v62 }
 0x640   :  { %v505_v1 = vadd.f32 %v532_v63, %v498_v0 }
 0x642   :  { %506 = vst.msk [vmem:[#allocation2] sm:$0x3] %vm336_vm4, %v505_v1 }
 0x643   :  { %651 = shalt.err (!%p648_p4)
}
 0x644   :  { %s652_s15 = scalar_lea.hbm %s865_s13, 32 }
 0x645   :  { %p653_p5 = scmp.ne.s32.totalorder %s865_s13, %s652_s15  ;;  %p656_p6 = scmp.lt.u32.totalorder %s652_s15, %s865_s13 }
 0x647   :  { %p658_p7 = pnand %p656_p6, %p653_p5 }
 0x649   :  { %661 = shalt.err (!%p658_p7)
}
 0x64a   :  { %516 = dma.vmem_to_hbm [thread:$0]  %s514_s30, 32, %s865_s13, [#allocation3]  }
 0x64b   :  { %662 = dma.done.wait [#allocation3], 32  }
 0x64c   :  { %663 = vsyncadd [#allocation3], 4294967264 }
 0x64d   :  { %520 = vsyncpa [#allocation3], 1 }

// kernel: text_encoder_bert_forward.5
= control target key start
LH: loop header
LB: loop body
LE: loop exit
PB: predicated region body
PF: predicated region fallthrough
CT: control target
= control target key end

     0   :  { %vm60_vm0 = vcmask 261120   ;;  %v1511_v8 = vmov 0.0   ;;  %vm1512_vm1 = vmmov 0   ;;  %s1514_s26 = smov 96   ;;  %s1515_s27 = smov 80   ;;  %vm146_vm2 = vcmask 130048   ;;  %s1793_s2 = inlined_call_operand.vmem [shape: f32[32,96], index: 2, kind: input, shape index: {}]   ;;  %s1794_s0 = inlined_call_operand.vmem [shape: f32[16,32], index: 0, kind: input, shape index: {}]   ;;  %s1795_s3 = inlined_call_operand.vmem [shape: f32[1,96], index: 3, kind: input, shape index: {}]   ;;  %s1796_s1 = inlined_call_operand.vmem [shape: f32[2,8], index: 1, kind: input, shape index: {}]   ;;  %s1797_s4 = inlined_call_operand.vmem [shape: f32[32,32], index: 4, kind: input, shape index: {}]   ;;  %s1798_s5 = inlined_call_operand.vmem [shape: f32[1,32], index: 5, kind: input, shape index: {}]   ;;  %s1799_s8 = inlined_call_operand.vmem [shape: f32[32,64], index: 8, kind: input, shape index: {}]   ;;  %s1800_s6 = inlined_call_operand.vmem [shape: f32[1,32], index: 6, kind: input, shape index: {}]   ;;  %s1801_s7 = inlined_call_operand.vmem [shape: f32[1,32], index: 7, kind: input, shape index: {}]   ;;  %s1802_s10 = inlined_call_operand.vmem [shape: f32[64,32], index: 10, kind: input, shape index: {}]   ;;  %s1803_s9 = inlined_call_operand.vmem [shape: f32[1,64], index: 9, kind: input, shape index: {}]   ;;  %s1804_s11 = inlined_call_operand.vmem [shape: f32[1,32], index: 11, kind: input, shape index: {}]   ;;  %s1805_s12 = inlined_call_operand.vmem [shape: f32[1,32], index: 12, kind: input, shape index: {}]   ;;  %s1806_s13 = inlined_call_operand.vmem [shape: f32[1,32], index: 13, kind: input, shape index: {}]   ;;  %s1807_s14 = inlined_call_operand.vmem [shape: f32[16,32], index: 14, kind: output, shape index: {}]  }
   0x1   :  { %v49_v0 = vld [vmem:[%s1793_s2] sm:$0xff]  ;;  %v50_v1 = vld [vmem:[%s1793_s2 + $0x8] sm:$0xff]  ;;  %v51_v2 = vld [vmem:[%s1793_s2 + $0x10] sm:$0xff]  ;;  %1359 = vmatprep.subr.mxu0 %v1511_v8  ;;  %1361 = vmatprep.mubr.msk.f32.mxu0 %vm1512_vm1, %v1511_v8  ;;  %vm227_vm3 = vcmask 64512   ;;  %s1516_s15 = smov 64   ;;  %s1518_s24 = smov 16  }
   0x2   :  { %v1430_v3 = vpack.c.bf16 %v50_v1, %v49_v0  ;;  %v52_v4 = vld [vmem:[%s1793_s2 + $0x18] sm:$0xff]  ;;  %v1610_v5 = vld [vmem:[%s1794_s0] sm:$0xff]  ;;  %v1617_v7 = vld [vmem:[%s1794_s0 + $0x8] sm:$0xff]  ;;  %s1513_s0 = smov 112   ;;  %vm1130_vm6 = vcmask 523264  }
   0x3   :  { %v1434_v6 = vpack.c.bf16 %v52_v4, %v51_v2  ;;  %1346 = vmatprep.mubr.msk.f32.mxu1 %vm60_vm0, %v1610_v5  ;;  %v1264_v9 = vld [vmem:[%s1795_s3] ss:$0 sm:$0xff]  ;;  %v1276_v31 = vld [vmem:[%s1796_s1 + $0x1] ss:$0 sm:$0xff] }
   0x4   :  { %1431 = vmatprep.subr.bf16.mxu1 %v1430_v3  ;;  %v1269_v21 = vld [vmem:[%s1796_s1] ss:$0 sm:$0xff]  ;;  %s1517_s1 = smov 48  }
   0x5   :  { %1433 = vmatpush3.bf16.msra.mxu1 %v1430_v3 }
   0x6   :  { %1435 = vmatprep.subr.bf16.mxu1 %v1434_v6 }
   0x9   :  { %1437 = vmatpush3.bf16.msra.mxu1 %v1434_v6 }
   0xa   :  { %1349 = vmatprep.subr.mxu1 %v1511_v8 }
   0xc   :  { %1347 = vmatmul.mubr.msk.f32.vlgmr.msra.gmra.mrb[0].mxu1 %vm60_vm0, %v1617_v7 }
   0xd   :  { %1351 = vmatprep.mubr.msk.f32.mxu1 %vm1512_vm1, %v1511_v8 }
  0xdf   :  { %v1348_v10 = vpop.f32.mrb[0].mxu1 }
  0xe0   :  { %v133_v11 = vpop.f32.mrb[1].mxu1  ;;  %v1634_v13 = vadd.f32 %v1348_v10, %v1264_v9 }
  0xe1   :  { %v1630_v12 = vadd.f32 %v1264_v9, %v133_v11 }
  0xe3   :  { %315 = vrot.lane.b32.xlu1 %v1630_v12, %s1513_s0  ;;  %144 = vrot.lane.b32.xlu0 %v1630_v12, %s1514_s26 }
  0xe7   :  { %489 = vrot.lane.b32.xlu1 %v1634_v13, %s1514_s26  ;;  %317 = vrot.lane.b32.xlu0 %v1630_v12, %s1515_s27 }
  0xeb   :  { %658 = vrot.lane.b32.xlu1 %v1634_v13, %s1513_s0  ;;  %660 = vrot.lane.b32.xlu0 %v1634_v13, %s1515_s27 }
 0x155   :  { %v145_v14 = vpop.permute.xlu0 %144  ;;  %v316_v15 = vpop.permute.xlu1 %315 }
 0x156   :  { %1350 = vmatpush3.xpose.msk.msra.mxu1 %vm146_vm2, %v145_v14 }
 0x157   :  { %1354 = vmatprep.subr.mxu1 %v1511_v8 }
 0x159   :  { %1352 = vmatmul.mubr.msk.f32.vlgmr.msra.gmra.mrb[2].mxu1 %vm146_vm2, %v1630_v12  ;;  %v318_v16 = vpop.permute.xlu0 %317  ;;  %v490_v17 = vpop.permute.xlu1 %489 }
 0x15a   :  { %1360 = vmatpush3.xpose.msk.msra.mxu0 %vm146_vm2, %v318_v16  ;;  %1356 = vmatprep.mubr.msk.f32.mxu1 %vm1512_vm1, %v1511_v8 }
 0x15b   :  { %1369 = vmatprep.subr.mxu0 %v1511_v8 }
 0x15d   :  { %1362 = vmatmul.mubr.msk.f32.vlgmr.msra.gmra.mrb[0].mxu0 %vm146_vm2, %v316_v15  ;;  %v661_v18 = vpop.permute.xlu0 %660  ;;  %v659_v19 = vpop.permute.xlu1 %658 }
 0x15e   :  { %1370 = vmatpush3.xpose.msk.msra.mxu0 %vm146_vm2, %v490_v17  ;;  %1371 = vmatprep.mubr.msk.f32.mxu0 %vm1512_vm1, %v1511_v8  ;;  %v830_v17 = vld [vmem:[%s1797_s4] sm:$0xff] }
 0x15f   :  { %1379 = vmatprep.subr.mxu0 %v1511_v8 }
 0x161   :  { %1372 = vmatmul.mubr.msk.f32.vlgmr.msra.gmra.mrb[2].mxu0 %vm146_vm2, %v1634_v13 }
 0x162   :  { %1380 = vmatpush3.xpose.msk.msra.mxu0 %vm146_vm2, %v661_v18  ;;  %1381 = vmatprep.mubr.msk.f32.mxu0 %vm1512_vm1, %v1511_v8  ;;  %v831_v18 = vld [vmem:[%s1797_s4 + $0x8] sm:$0xff] }
 0x165   :  { %1382 = vmatmul.mubr.msk.f32.vlgmr.msra.gmra.mrb[4].mxu0 %vm146_vm2, %v659_v19  ;;  %v1438_v19 = vpack.c.bf16 %v831_v18, %v830_v17  ;;  %v1119_v18 = vld [vmem:[%s1802_s10 + $0x20] sm:$0xff] }
 0x167   :  { %1439 = vmatprep.subr.bf16.mxu0 %v1438_v19 }
 0x168   :  { %1441 = vmatpush3.bf16.msra.mxu0 %v1438_v19  ;;  %v1120_v19 = vld [vmem:[%s1802_s10 + $0x28] sm:$0xff] }
 0x22c   :  { %v217_v20 = vpop.f32.mrb[2].mxu1 }
 0x22d   :  { %v221_v22 = vmul.f32 0.25, %v217_v20  ;;  %v1353_v23 = vpop.f32.mrb[3].mxu1  ;;  %v832_v20 = vld [vmem:[%s1797_s4 + $0x10] sm:$0xff] }
 0x22f   :  { %v226_v24 = vadd.f32 %v1269_v21, %v221_v22 }
 0x230   :  { %v389_v25 = vpop.f32.mrb[0].mxu0 }
 0x231   :  { %v393_v26 = vmul.f32 0.25, %v389_v25  ;;  %v1363_v27 = vpop.f32.mrb[1].mxu0  ;;  %v228_v28 = vsel %vm227_vm3, %v226_v24, -inf }
 0x232   :  { %229 = vmax.xlane.f32.xlu0 %v228_v28 }
 0x233   :  { %v394_v29 = vadd.f32 %v1269_v21, %v393_v26 }
 0x234   :  { %v561_v30 = vpop.f32.mrb[2].mxu0 }
 0x235   :  { %v565_v32 = vmul.f32 0.25, %v561_v30  ;;  %v1373_v33 = vpop.f32.mrb[3].mxu0  ;;  %v395_v34 = vsel %vm227_vm3, %v394_v29, -inf }
 0x236   :  { %396 = vmax.xlane.f32.xlu1 %v395_v34  ;;  %v1281_v34 = vld [vmem:[%s1798_s5] ss:$0 sm:$0xff] }
 0x237   :  { %v570_v35 = vadd.f32 %v1276_v31, %v565_v32 }
 0x238   :  { %v732_v36 = vpop.f32.mrb[4].mxu0 }
 0x239   :  { %v736_v37 = vmul.f32 0.25, %v732_v36  ;;  %v1383_v38 = vpop.f32.mrb[5].mxu0  ;;  %v571_v39 = vsel %vm227_vm3, %v570_v35, -inf }
 0x23a   :  { %572 = vmax.xlane.f32.xlu0 %v571_v39 }
 0x23b   :  { %v737_v40 = vadd.f32 %v1276_v31, %v736_v37 }
 0x23d   :  { %v738_v41 = vsel %vm227_vm3, %v737_v40, -inf }
 0x23e   :  { %739 = vmax.xlane.f32.xlu0 %v738_v41 }
 0x247   :  { %239 = vrot.lane.b32.xlu1 %v1630_v12, %s1516_s15 }
 0x2bf   :  { %v230_v42 = vpop.xlane.xlu0 %229 }
 0x2c0   :  { %v231_v43 = vsub.f32 %v226_v24, %v230_v42 }
 0x2c2   :  { %v232_v44 = vmul.f32 1.442695, %v231_v43 }
 0x2c3   :  { %v397_v45 = vpop.xlane.xlu1 %396 }
 0x2c4   :  { %1479 = vpow2.f32 %v232_v44  ;;  %v398_v46 = vsub.f32 %v394_v29, %v397_v45 }
 0x2c6   :  { %v399_v47 = vmul.f32 1.442695, %v398_v46 }
 0x2c7   :  { %v240_v48 = vpop.permute.xlu1 %239  ;;  %v573_v49 = vpop.xlane.xlu0 %572 }
 0x2c8   :  { %1481 = vpow2.f32 %v399_v47  ;;  %v574_v50 = vsub.f32 %v570_v35, %v573_v49  ;;  %1355 = vmatpush3.msra.mxu1 %v240_v48 }
 0x2c9   :  { %1364 = vmatprep.subr.mxu1 %v1511_v8 }
 0x2ca   :  { %v575_v51 = vmul.f32 1.442695, %v574_v50 }
 0x2cb   :  { %v740_v52 = vpop.xlane.xlu0 %739 }
 0x2cc   :  { %1483 = vpow2.f32 %v575_v51  ;;  %v741_v53 = vsub.f32 %v737_v40, %v740_v52  ;;  %v970_v52 = vld [vmem:[%s1799_s8 + $0x8] sm:$0xff] }
 0x2ce   :  { %v1480_v54 = vpop.eup %1479  ;;  %v742_v55 = vmul.f32 1.442695, %v741_v53 }
 0x2cf   :  { %v234_v56 = vsel %vm227_vm3, %v1480_v54, 0.0 }
 0x2d0   :  { %1485 = vpow2.f32 %v742_v55  ;;  %235 = vadd.xlane.f32.xlu1 %v234_v56  ;;  %v972_v55 = vld [vmem:[%s1799_s8 + $0x18] sm:$0xff] }
 0x2d2   :  { %v1482_v57 = vpop.eup %1481 }
 0x2d3   :  { %v401_v58 = vsel %vm227_vm3, %v1482_v57, 0.0 }
 0x2d4   :  { %402 = vadd.xlane.f32.xlu0 %v401_v58 }
 0x2d6   :  { %v1484_v59 = vpop.eup %1483 }
 0x2d7   :  { %v577_v60 = vsel %vm227_vm3, %v1484_v59, 0.0 }
 0x2d8   :  { %578 = vadd.xlane.f32.xlu1 %v577_v60 }
 0x2da   :  { %v1486_v61 = vpop.eup %1485 }
 0x2db   :  { %v744_v62 = vsel %vm227_vm3, %v1486_v61, 0.0 }
 0x2dc   :  { %745 = vadd.xlane.f32.xlu0 %v744_v62 }
 0x2e9   :  { %582 = vrot.lane.b32.xlu1 %v1634_v13, %s1516_s15 }
 0x2ed   :  { %749 = vrot.lane.b32.xlu1 %v1634_v13, %s1517_s1 }
 0x2f2   :  { %406 = vrot.lane.b32.xlu0 %v1630_v12, %s1517_s1 }
 0x35d   :  { %v236_v63 = vpop.xlane.xlu1 %235 }
 0x35e   :  { %1487 = vrcp.f32 %v236_v63 }
 0x361   :  { %v403_v0 = vpop.xlane.xlu0 %402 }
 0x362   :  { %1489 = vrcp.f32 %v403_v0  ;;  %v1284_v0 = vld [vmem:[%s1800_s6] ss:$0 sm:$0xff] }
 0x365   :  { %v579_v1 = vpop.xlane.xlu1 %578 }
 0x366   :  { %1491 = vrcp.f32 %v579_v1 }
 0x368   :  { %v1488_v2 = vpop.eup %1487 }
 0x369   :  { %v238_v3 = vmul.f32 %v1488_v2, %v1480_v54  ;;  %v746_v4 = vpop.xlane.xlu0 %745  ;;  %v583_v10 = vpop.permute.xlu1 %582  ;;  %v971_v54 = vld [vmem:[%s1799_s8 + $0x10] sm:$0xff]  ;;  %v1285_v2 = vld [vmem:[%s1801_s7] ss:$0 sm:$0xff] }
 0x36a   :  { %1493 = vrcp.f32 %v746_v4  ;;  %v1450_v56 = vpack.c.bf16 %v972_v55, %v971_v54 }
 0x36b   :  { %1357 = vmatmul.mubr.msk.f32.vlgmr.msra.gmra.mrb[4].mxu1 %vm227_vm3, %v238_v3 }
 0x36c   :  { %v1490_v6 = vpop.eup %1489  ;;  %1366 = vmatprep.mubr.msk.f32.mxu1 %vm1512_vm1, %v1511_v8 }
 0x36d   :  { %v405_v9 = vmul.f32 %v1490_v6, %v1482_v57  ;;  %v407_v11 = vpop.permute.xlu0 %406  ;;  %v750_v14 = vpop.permute.xlu1 %749 }
 0x36e   :  { %1365 = vmatpush3.msra.mxu1 %v407_v11 }
 0x36f   :  { %1367 = vmatmul.mubr.msk.f32.vlgmr.msra.gmra.mrb[6].mxu1 %vm227_vm3, %v405_v9  ;;  %1374 = vmatprep.subr.mxu1 %v1511_v8 }
 0x370   :  { %v1492_v12 = vpop.eup %1491  ;;  %1375 = vmatpush3.msra.mxu1 %v583_v10  ;;  %1376 = vmatprep.mubr.msk.f32.mxu1 %vm1512_vm1, %v1511_v8 }
 0x371   :  { %v581_v13 = vmul.f32 %v1492_v12, %v1484_v59  ;;  %1384 = vmatprep.subr.mxu1 %v1511_v8  ;;  %v1115_v12 = vld [vmem:[%s1802_s10] sm:$0xff] }
 0x373   :  { %1377 = vmatmul.mubr.msk.f32.vlgmr.msra.gmra.mrb[8].mxu1 %vm227_vm3, %v581_v13  ;;  %v1116_v13 = vld [vmem:[%s1802_s10 + $0x8] sm:$0xff] }
 0x374   :  { %v1494_v15 = vpop.eup %1493  ;;  %1385 = vmatpush3.msra.mxu1 %v750_v14  ;;  %1386 = vmatprep.mubr.msk.f32.mxu1 %vm1512_vm1, %v1511_v8  ;;  %v833_v8 = vld [vmem:[%s1797_s4 + $0x18] sm:$0xff]  ;;  %v1454_v14 = vpack.c.bf16 %v1116_v13, %v1115_v12 }
 0x375   :  { %v748_v16 = vmul.f32 %v1494_v15, %v1486_v61  ;;  %v1442_v21 = vpack.c.bf16 %v833_v8, %v832_v20  ;;  %v1117_v15 = vld [vmem:[%s1802_s10 + $0x10] sm:$0xff]  ;;  %v1462_v20 = vpack.c.bf16 %v1120_v19, %v1119_v18  ;;  %v1289_v18 = vld [vmem:[%s1804_s11] ss:$0 sm:$0xff] }
 0x376   :  { %v1121_v8 = vld [vmem:[%s1802_s10 + $0x30] sm:$0xff] }
 0x377   :  { %1387 = vmatmul.mubr.msk.f32.vlgmr.msra.gmra.mrb[10].mxu1 %vm227_vm3, %v748_v16  ;;  %1443 = vmatprep.subr.bf16.mxu0 %v1442_v21  ;;  %v1118_v16 = vld [vmem:[%s1802_s10 + $0x18] sm:$0xff] }
 0x378   :  { %1445 = vmatpush3.bf16.msra.mxu0 %v1442_v21  ;;  %v1458_v17 = vpack.c.bf16 %v1118_v16, %v1117_v15  ;;  %v1122_v21 = vld [vmem:[%s1802_s10 + $0x38] sm:$0xff] }
 0x379   :  { %1455 = vmatprep.subr.bf16.mxu0 %v1454_v14 }
 0x43e   :  { %v311_v22 = vpop.f32.mrb[4].mxu1 }
 0x43f   :  { %v1358_v23 = vpop.f32.mrb[5].mxu1 }
 0x440   :  { %v1286_v23 = vld [vmem:[%s1803_s9] ss:$0 sm:$0xff] }
 0x442   :  { %v478_v24 = vpop.f32.mrb[6].mxu1 }
 0x443   :  { %483 = vrot.lane.b32.xlu0 %v478_v24, %s1518_s24  ;;  %v1368_v25 = vpop.f32.mrb[7].mxu1 }
 0x446   :  { %v654_v26 = vpop.f32.mrb[8].mxu1 }
 0x447   :  { %v1378_v27 = vpop.f32.mrb[9].mxu1 }
 0x44a   :  { %v821_v28 = vpop.f32.mrb[10].mxu1 }
 0x44b   :  { %826 = vrot.lane.b32.xlu1 %v821_v28, %s1518_s24  ;;  %v1388_v29 = vpop.f32.mrb[11].mxu1 }
 0x4b5   :  { %v484_v30 = vpop.permute.xlu0 %483 }
 0x4b6   :  { %v486_v31 = vsel %vm146_vm2, %v311_v22, %v484_v30  ;;  %v1466_v22 = vpack.c.bf16 %v1122_v21, %v1121_v8 }
 0x4b7   :  { %1397 = vmatprep.mubr.msk.f32.mxu0 %vm60_vm0, %v486_v31 }
 0x4bd   :  { %v827_v32 = vpop.permute.xlu1 %826 }
 0x4be   :  { %v829_v33 = vsel %vm146_vm2, %v654_v26, %v827_v32 }
 0x4bf   :  { %1398 = vmatmul.mubr.msk.f32.vlgmr.msra.gmra.mrb[6].mxu0 %vm60_vm0, %v829_v33 }
 0x4c0   :  { %1457 = vmatpush3.bf16.msra.mxu0 %v1454_v14 }
 0x4c1   :  { %1459 = vmatprep.subr.bf16.mxu0 %v1458_v17 }
 0x4c4   :  { %1461 = vmatpush3.bf16.msra.mxu0 %v1458_v17 }
 0x4c5   :  { %1463 = vmatprep.subr.bf16.mxu0 %v1462_v20 }
 0x4c8   :  { %1465 = vmatpush3.bf16.msra.mxu0 %v1462_v20 }
 0x4c9   :  { %1467 = vmatprep.subr.bf16.mxu0 %v1466_v22 }
 0x4cc   :  { %1469 = vmatpush3.bf16.msra.mxu0 %v1466_v22 }
 0x592   :  { %v1399_v35 = vpop.f32.mrb[6].mxu0 }
 0x593   :  { %v919_v36 = vadd.f32 %v1399_v35, %v1281_v34  ;;  %v913_v37 = vpop.f32.mrb[7].mxu0 }
 0x594   :  { %v914_v38 = vadd.f32 %v1281_v34, %v913_v37 }
 0x595   :  { %v923_v39 = vadd.f32 %v919_v36, %v1617_v7 }
 0x596   :  { %v922_v40 = vadd.f32 %v914_v38, %v1610_v5  ;;  %v969_v5 = vld [vmem:[%s1799_s8] sm:$0xff] }
 0x597   :  { %v929_v41 = vsel %vm60_vm0, %v923_v39, 0.0  ;;  %v1446_v53 = vpack.c.bf16 %v970_v52, %v969_v5 }
 0x598   :  { %930 = vadd.xlane.f32.xlu1 %v929_v41  ;;  %v926_v42 = vsel %vm60_vm0, %v922_v40, 0.0 }
 0x599   :  { %927 = vadd.xlane.f32.xlu0 %v926_v42  ;;  %1447 = vmatprep.subr.bf16.mxu1 %v1446_v53 }
 0x59a   :  { %1449 = vmatpush3.bf16.msra.mxu1 %v1446_v53 }
 0x59b   :  { %1451 = vmatprep.subr.bf16.mxu1 %v1450_v56 }
 0x59e   :  { %1453 = vmatpush3.bf16.msra.mxu1 %v1450_v56 }
 0x625   :  { %v931_v43 = vpop.xlane.xlu1 %930 }
 0x626   :  { %v934_v44 = vmul.f32 0.03125, %v931_v43  ;;  %v928_v45 = vpop.xlane.xlu0 %927 }
 0x627   :  { %v933_v46 = vmul.f32 0.03125, %v928_v45 }
 0x628   :  { %v936_v47 = vsub.f32 %v923_v39, %v934_v44 }
 0x629   :  { %v935_v48 = vsub.f32 %v922_v40, %v933_v46 }
 0x62a   :  { %v938_v51 = vmul.f32 %v936_v47, %v936_v47 }
 0x62b   :  { %v937_v49 = vmul.f32 %v935_v48, %v935_v48 }
 0x62c   :  { %v942_v7 = vsel %vm60_vm0, %v938_v51, 0.0 }
 0x62d   :  { %v939_v50 = vsel %vm60_vm0, %v937_v49, 0.0 }
 0x62e   :  { %940 = vadd.xlane.f32.xlu0 %v939_v50 }
 0x632   :  { %943 = vadd.xlane.f32.xlu0 %v942_v7 }
 0x6bb   :  { %v941_v57 = vpop.xlane.xlu0 %940 }
 0x6bc   :  { %v945_v58 = vmul.f32 0.03125, %v941_v57 }
 0x6be   :  { %v947_v59 = vadd.f32 1e-12, %v945_v58 }
 0x6bf   :  { %v944_v60 = vpop.xlane.xlu0 %943 }
 0x6c0   :  { %1495 = vrsqrt.f32 %v947_v59  ;;  %v946_v61 = vmul.f32 0.03125, %v944_v60 }
 0x6c2   :  { %v948_v62 = vadd.f32 1e-12, %v946_v61 }
 0x6c4   :  { %1497 = vrsqrt.f32 %v948_v62 }
 0x6ca   :  { %v1496_v63 = vpop.eup %1495 }
 0x6cb   :  { %v951_v1 = vmul.f32 %v1496_v63, %v935_v48 }
 0x6cd   :  { %v959_v3 = vmul.f32 %v1284_v0, %v951_v1  ;;  %v1519_v1 = vmov -1.0  }
 0x6ce   :  { %v1498_v4 = vpop.eup %1497 }
 0x6cf   :  { %v952_v6 = vmul.f32 %v1498_v4, %v936_v47  ;;  %v1735_v9 = vadd.f32 %v1285_v2, %v959_v3 }
 0x6d1   :  { %v960_v10 = vmul.f32 %v1284_v0, %v952_v6  ;;  %1408 = vmatprep.mubr.msk.f32.mxu1 %vm60_vm0, %v1735_v9 }
 0x6d3   :  { %v1739_v11 = vadd.f32 %v1285_v2, %v960_v10 }
 0x6d5   :  { %1409 = vmatmul.mubr.msk.f32.vlgmr.msra.gmra.mrb[12].mxu1 %vm60_vm0, %v1739_v11 }
 0x7a8   :  { %v1410_v24 = vpop.f32.mrb[12].mxu1 }
 0x7a9   :  { %v1058_v25 = vadd.f32 %v1410_v24, %v1286_v23  ;;  %v1052_v26 = vpop.f32.mrb[13].mxu1 }
 0x7aa   :  { %v1053_v27 = vadd.f32 %v1286_v23, %v1052_v26 }
 0x7ab   :  { %v1064_v28 = vmul.f32 0.70710677, %v1058_v25  ;;  %v1062_v15 = vmul.f32 0.5, %v1058_v25 }
 0x7ac   :  { %v1063_v29 = vmul.f32 0.70710677, %v1053_v27  ;;  %v1061_v13 = vmul.f32 0.5, %v1053_v27 }
 0x7ad   :  { %v1070_v30 = vand.u32 2147483647, %v1064_v28  ;;  %vm1066_vm4 = vcmp.ge.f32.partialorder %v1064_v28, 0.0 }
 0x7ae   :  { %v1069_v31 = vand.u32 2147483647, %v1063_v29  ;;  %vm1065_vm5 = vcmp.ge.f32.partialorder %v1063_v29, 0.0  ;;  %v1068_v2 = vsel %vm1066_vm4, 1.0, %v1519_v1 }
 0x7af   :  { %v1072_v32 = vmul.f32 0.3275911, %v1070_v30  ;;  %v1098_v36 = vsub.f32 0.0, %v1070_v30  ;;  %v1067_v6 = vsel %vm1065_vm5, 1.0, %v1519_v1 }
 0x7b0   :  { %v1071_v33 = vmul.f32 0.3275911, %v1069_v31  ;;  %v1097_v37 = vsub.f32 0.0, %v1069_v31 }
 0x7b1   :  { %v1074_v34 = vadd.f32 1.0, %v1072_v32  ;;  %v1100_v39 = vmul.f32 %v1098_v36, %v1070_v30 }
 0x7b2   :  { %v1073_v35 = vadd.f32 1.0, %v1071_v33  ;;  %v1099_v42 = vmul.f32 %v1097_v37, %v1069_v31 }
 0x7b3   :  { %1499 = vrcp.f32 %v1074_v34  ;;  %v1103_v45 = vmul.f32 1.442695, %v1100_v39 }
 0x7b4   :  { %1501 = vrcp.f32 %v1073_v35  ;;  %v1101_v48 = vmul.f32 1.442695, %v1099_v42 }
 0x7b5   :  { %1503 = vpow2.f32 %v1103_v45 }
 0x7b6   :  { %1505 = vpow2.f32 %v1101_v48 }
 0x7bd   :  { %v1500_v38 = vpop.eup %1499 }
 0x7be   :  { %v1502_v40 = vpop.eup %1501  ;;  %v1080_v41 = vmul.f32 1.0614054, %v1500_v38 }
 0x7bf   :  { %v1079_v43 = vmul.f32 1.0614054, %v1502_v40  ;;  %v1504_v59 = vpop.eup %1503 }
 0x7c0   :  { %v1082_v44 = vadd.f32 -1.4531521, %v1080_v41  ;;  %v1506_v61 = vpop.eup %1505  ;;  %v1292_v41 = vld [vmem:[%s1805_s12] ss:$0 sm:$0xff] }
 0x7c1   :  { %v1081_v46 = vadd.f32 -1.4531521, %v1079_v43 }
 0x7c2   :  { %v1084_v47 = vmul.f32 %v1500_v38, %v1082_v44  ;;  %v1293_v44 = vld [vmem:[%s1806_s13] ss:$0 sm:$0xff] }
 0x7c3   :  { %v1083_v49 = vmul.f32 %v1502_v40, %v1081_v46 }
 0x7c4   :  { %v1086_v50 = vadd.f32 1.4214138, %v1084_v47 }
 0x7c5   :  { %v1085_v51 = vadd.f32 1.4214138, %v1083_v49 }
 0x7c6   :  { %v1088_v7 = vmul.f32 %v1500_v38, %v1086_v50 }
 0x7c7   :  { %v1087_v5 = vmul.f32 %v1502_v40, %v1085_v51 }
 0x7c8   :  { %v1090_v52 = vadd.f32 -0.28449672, %v1088_v7 }
 0x7c9   :  { %v1089_v53 = vadd.f32 -0.28449672, %v1087_v5 }
 0x7ca   :  { %v1092_v54 = vmul.f32 %v1500_v38, %v1090_v52 }
 0x7cb   :  { %v1091_v55 = vmul.f32 %v1502_v40, %v1089_v53 }
 0x7cc   :  { %v1094_v56 = vadd.f32 0.2548296, %v1092_v54 }
 0x7cd   :  { %v1093_v57 = vadd.f32 0.2548296, %v1091_v55 }
 0x7ce   :  { %v1096_v58 = vmul.f32 %v1500_v38, %v1094_v56 }
 0x7cf   :  { %v1095_v60 = vmul.f32 %v1502_v40, %v1093_v57 }
 0x7d0   :  { %v1106_v62 = vmul.f32 %v1504_v59, %v1096_v58 }
 0x7d1   :  { %v1105_v63 = vmul.f32 %v1506_v61, %v1095_v60 }
 0x7d2   :  { %v1108_v0 = vsub.f32 1.0, %v1106_v62 }
 0x7d3   :  { %v1107_v3 = vsub.f32 1.0, %v1105_v63 }
 0x7d4   :  { %v1110_v4 = vmul.f32 %v1108_v0, %v1068_v2 }
 0x7d5   :  { %v1109_v10 = vmul.f32 %v1107_v3, %v1067_v6 }
 0x7d6   :  { %v1112_v12 = vadd.f32 1.0, %v1110_v4 }
 0x7d7   :  { %v1111_v14 = vadd.f32 1.0, %v1109_v10 }
 0x7d8   :  { %v1114_v17 = vmul.f32 %v1112_v12, %v1062_v15 }
 0x7d9   :  { %v1113_v16 = vmul.f32 %v1111_v14, %v1061_v13 }
 0x7db   :  { %1427 = vmatprep.mubr.msk.f32.mxu0 %vm1130_vm6, %v1113_v16 }
 0x7dc   :  { %1428 = vmatmul.mubr.msk.f32.vlgmr.msra.gmra.mrb[8].mxu0 %vm1130_vm6, %v1114_v17 }
 0x8af   :  { %v1429_v19 = vpop.f32.mrb[8].mxu0 }
 0x8b0   :  { %v1209_v20 = vadd.f32 %v1429_v19, %v1289_v18  ;;  %v1203_v8 = vpop.f32.mrb[9].mxu0 }
 0x8b1   :  { %v1204_v21 = vadd.f32 %v1289_v18, %v1203_v8 }
 0x8b2   :  { %v1213_v22 = vadd.f32 %v1209_v20, %v1739_v11 }
 0x8b3   :  { %v1212_v23 = vadd.f32 %v1204_v21, %v1735_v9 }
 0x8b4   :  { %v1219_v24 = vsel %vm60_vm0, %v1213_v22, 0.0 }
 0x8b5   :  { %1220 = vadd.xlane.f32.xlu0 %v1219_v24  ;;  %v1216_v25 = vsel %vm60_vm0, %v1212_v23, 0.0 }
 0x8b6   :  { %1217 = vadd.xlane.f32.xlu1 %v1216_v25 }
 0x942   :  { %v1221_v26 = vpop.xlane.xlu0 %1220 }
 0x943   :  { %v1223_v27 = vmul.f32 0.03125, %v1221_v26  ;;  %v1218_v28 = vpop.xlane.xlu1 %1217 }
 0x944   :  { %v1222_v29 = vmul.f32 0.03125, %v1218_v28 }
 0x945   :  { %v1225_v30 = vsub.f32 %v1213_v22, %v1223_v27 }
 0x946   :  { %v1224_v31 = vsub.f32 %v1212_v23, %v1222_v29 }
 0x947   :  { %v1227_v32 = vmul.f32 %v1225_v30, %v1225_v30 }
 0x948   :  { %v1226_v33 = vmul.f32 %v1224_v31, %v1224_v31 }
 0x949   :  { %v1231_v34 = vsel %vm60_vm0, %v1227_v32, 0.0 }
 0x94a   :  { %1232 = vadd.xlane.f32.xlu0 %v1231_v34  ;;  %v1228_v11 = vsel %vm60_vm0, %v1226_v33, 0.0 }
 0x94b   :  { %1229 = vadd.xlane.f32.xlu1 %v1228_v11 }
 0x9d7   :  { %v1233_v9 = vpop.xlane.xlu0 %1232 }
 0x9d8   :  { %v1235_v35 = vmul.f32 0.03125, %v1233_v9  ;;  %v1230_v36 = vpop.xlane.xlu1 %1229 }
 0x9d9   :  { %v1234_v37 = vmul.f32 0.03125, %v1230_v36 }
 0x9da   :  { %v1237_v38 = vadd.f32 1e-12, %v1235_v35 }
 0x9db   :  { %v1236_v39 = vadd.f32 1e-12, %v1234_v37 }
 0x9dc   :  { %1507 = vrsqrt.f32 %v1237_v38 }
 0x9dd   :  { %1509 = vrsqrt.f32 %v1236_v39 }
 0x9e6   :  { %v1508_v40 = vpop.eup %1507 }
 0x9e7   :  { %v1510_v42 = vpop.eup %1509  ;;  %v1241_v43 = vmul.f32 %v1508_v40, %v1225_v30 }
 0x9e8   :  { %v1240_v45 = vmul.f32 %v1510_v42, %v1224_v31 }
 0x9e9   :  { %v1249_v46 = vmul.f32 %v1292_v41, %v1241_v43 }
 0x9ea   :  { %v1248_v47 = vmul.f32 %v1292_v41, %v1240_v45 }
 0x9eb   :  { %v1257_v48 = vadd.f32 %v1293_v44, %v1249_v46 }
 0x9ec   :  { %v1256_v49 = vadd.f32 %v1293_v44, %v1248_v47 }
 0x9ed   :  { %1259 = vst.msk [vmem:[%s1807_s14 + $0x8] sm:$0xff] %vm60_vm0, %v1257_v48 }
 0x9ee   :  { %1258 = vst.msk [vmem:[%s1807_s14] sm:$0xff] %vm60_vm0, %v1256_v49 }

</bundles_post_ra>
